<compile_context>
chip_gen: v7x
topology: tpu7x:2x2x1
jax: 0.10.0
libtpu: 0.0.40
codegen_flags: <defaults>
</compile_context>

<pallas_src>
import functools

import jax
import jax.numpy as jnp
from jax import lax
from jax.experimental import pallas as pl
from jax.experimental.pallas import tpu as pltpu

_EPS = 1e-5
_INV_SQRT2 = 0.7071067811865475          # 1/sqrt(2)   (exact erf GELU)
_TANH_C0 = 0.7978845608028654            # sqrt(2/pi)  (tanh GELU)
_TANH_C1 = 0.044715


def _ffn_kernel(x_ref, w1_ref, b1_ref, g1_ref, be1_ref,
                w2_ref, b2_ref, g2_ref, be2_ref, o_ref,
                *, n_sub, tm_sub, exact_gelu):
    f32 = jnp.float32
    # Hoist grid-invariant operands once per grid step.
    b1 = b1_ref[...].astype(f32)          # (1, F)
    g1 = g1_ref[...].astype(f32)
    be1 = be1_ref[...].astype(f32)
    b2 = b2_ref[...].astype(f32)          # (1, D)
    g2 = g2_ref[...].astype(f32)
    be2 = be2_ref[...].astype(f32)
    w1 = w1_ref[...]                      # (D, F) in MXU dtype
    w2 = w2_ref[...]                      # (F, D) in MXU dtype

    inv_f = 1.0 / w1.shape[1]
    inv_d = 1.0 / w2.shape[1]

    def sub_step(j, carry):
        # Independent row sub-chunk: exposes MXU/VPU overlap to the scheduler.
        r0 = pl.multiple_of(j * tm_sub, tm_sub)
        xs = x_ref[pl.ds(r0, tm_sub), :]

        # ---- linear1 on the MXU: (tm_sub, D) @ (D, F), f32 accumulation ----
        h = jnp.dot(xs, w1, preferred_element_type=f32) + b1

        # ---- layer_norm1 over ff_dim (fused pass, clamped variance) ----
        mu = jnp.sum(h, axis=-1, keepdims=True) * inv_f
        ex2 = jnp.sum(h * h, axis=-1, keepdims=True) * inv_f
        var = jnp.maximum(ex2 - mu * mu, 0.0)
        h = (h - mu) * lax.rsqrt(var + _EPS) * g1 + be1

        # ---- GELU ----
        if exact_gelu:
            # torch.nn.functional.gelu default (approximate='none')
            h = 0.5 * h * (1.0 + lax.erf(h * _INV_SQRT2))
        else:
            # torch approximate='tanh': transcendental runs on the EUP slot.
            h = 0.5 * h * (1.0 + jnp.tanh(_TANH_C0 * (h + _TANH_C1 * h * h * h)))

        # Cast the (tm_sub, F) intermediate to the matmul dtype before dot2:
        # halves its live VMEM footprint and the vld bytes on the bf16 path.
        h = h.astype(w2.dtype)

        # ---- linear2 on the MXU: (tm_sub, F) @ (F, D), f32 accumulation ----
        y = jnp.dot(h, w2, preferred_element_type=f32) + b2

        # ---- layer_norm2 over input_dim ----
        mu2 = jnp.sum(y, axis=-1, keepdims=True) * inv_d
        ey2 = jnp.sum(y * y, axis=-1, keepdims=True) * inv_d
        var2 = jnp.maximum(ey2 - mu2 * mu2, 0.0)
        y = (y - mu2) * lax.rsqrt(var2 + _EPS) * g2 + be2

        o_ref[pl.ds(r0, tm_sub), :] = y.astype(o_ref.dtype)
        return carry

    lax.fori_loop(0, n_sub, sub_step, 0, unroll=True)


def _const_spec(shape, single_buffer):
    """BlockSpec for a grid-invariant operand (constant index_map)."""
    if single_buffer and hasattr(pl, "Buffered"):
        try:
            return pl.BlockSpec(shape, lambda i: (0, 0),
                                pipeline_mode=pl.Buffered(1))
        except TypeError:  # jax build without the pipeline_mode kwarg
            pass
    return pl.BlockSpec(shape, lambda i: (0, 0))


def _pick_n_sub(tm):
    """Largest sub-chunk count in {4,2,1} keeping tm_sub a multiple of 8."""
    for n in (4, 2, 1):
        if tm % (8 * n) == 0 and (tm // n) >= 8:
            return n
    return 1


@functools.lru_cache(maxsize=1)
def _vmem_cap_bytes():
    """Chip-aware VMEM request cap (leave headroom for compiler/spills)."""
    try:
        cap = int(pltpu.get_tpu_info().vmem_capacity_bytes)
    except Exception:
        cap = 64 << 20
    if cap >= (96 << 20):       # 128 MiB parts (v5e / v6e)
        return 104 << 20
    return 52 << 20             # 64 MiB parts (v7x): spill headroom


@functools.partial(
    jax.jit,
    static_argnames=("tm", "mxu_dtype", "single_buffer_params",
                     "exact_gelu", "vmem_cap"))
def _ffn_jit(x, w1, b1, g1, be1, w2, b2, g2, be2, *,
             tm, mxu_dtype, single_buffer_params, exact_gelu, vmem_cap):
    B, S, D = x.shape
    F = w1.shape[1]
    M = B * S

    # Row tile: multiple of 8, no larger than the (8-padded) row count.
    m_pad8 = ((M + 7) // 8) * 8
    tm = max(8, (min(int(tm), m_pad8) // 8) * 8)
    # v7x megacore: keep grid_m >= 2 whenever there are > 8 rows, so the
    # "parallel" row axis can shard across both TensorCores.
    if m_pad8 <= tm and m_pad8 > 8:
        tm = ((pl.cdiv(m_pad8, 2) + 7) // 8) * 8
    grid_m = pl.cdiv(M, tm)
    M_pad = grid_m * tm

    n_sub = _pick_n_sub(tm)
    tm_sub = tm // n_sub

    x2d = x.reshape(M, D)
    if M_pad != M:
        x2d = jnp.pad(x2d, ((0, M_pad - M), (0, 0)))

    # Only cast when needed (pass pre-cast bf16 weights to avoid a per-call
    # HBM cast pass; .astype to the same dtype is a no-op under jit anyway).
    x2d = x2d if x2d.dtype == mxu_dtype else x2d.astype(mxu_dtype)
    w1c = w1 if w1.dtype == mxu_dtype else w1.astype(mxu_dtype)
    w2c = w2 if w2.dtype == mxu_dtype else w2.astype(mxu_dtype)
    f32 = jnp.float32
    b1c, g1c, be1c = (v.reshape(1, F).astype(f32) for v in (b1, g1, be1))
    b2c, g2c, be2c = (v.reshape(1, D).astype(f32) for v in (b2, g2, be2))

    # VMEM budget: x/out double-buffered, weights single (or double) buffered,
    # plus the live f32 intermediates of one (tm_sub, F) sub-chunk.
    itemsize = jnp.dtype(mxu_dtype).itemsize
    out_itemsize = jnp.dtype(x.dtype).itemsize
    wbuf = 1 if single_buffer_params else 2
    need = (2 * tm * D * itemsize             # x (double buffered)
            + 2 * tm * D * out_itemsize       # out (double buffered)
            + wbuf * 2 * D * F * itemsize     # W1 + W2
            + wbuf * 4 * (F + D) * 4          # bias / gamma / beta vectors
            + 6 * tm_sub * F * 4)             # live f32 intermediates
    vmem_limit = int(min(max(int(1.5 * need), 32 << 20), vmem_cap))

    kernel = functools.partial(_ffn_kernel, n_sub=n_sub, tm_sub=tm_sub,
                               exact_gelu=exact_gelu)

    out2d = pl.pallas_call(
        kernel,
        out_shape=jax.ShapeDtypeStruct((M_pad, D), x.dtype),
        grid=(grid_m,),
        in_specs=[
            pl.BlockSpec((tm, D), lambda i: (i, 0)),       # x rows
            _const_spec((D, F), single_buffer_params),     # W1
            _const_spec((1, F), single_buffer_params),     # b1
            _const_spec((1, F), single_buffer_params),     # gamma1
            _const_spec((1, F), single_buffer_params),     # beta1
            _const_spec((F, D), single_buffer_params),     # W2
            _const_spec((1, D), single_buffer_params),     # b2
            _const_spec((1, D), single_buffer_params),     # gamma2
            _const_spec((1, D), single_buffer_params),     # beta2
        ],
        out_specs=pl.BlockSpec((tm, D), lambda i: (i, 0)),
        compiler_params=pltpu.CompilerParams(
            dimension_semantics=("parallel",),
            vmem_limit_bytes=vmem_limit),
    )(x2d, w1c, b1c, g1c, be1c, w2c, b2c, g2c, be2c)

    return out2d[:M].reshape(B, S, D)


def feed_forward_network(x, w1, b1, g1, be1, w2, b2, g2, be2, *,
                         tm=None, mxu_dtype=jnp.bfloat16,
                         single_buffer_params=True, exact_gelu=True):
    vmem_cap = _vmem_cap_bytes()
    if tm is None:
        # Bigger row tiles on 128 MiB chips (v5e/v6e); 256 on v7x's 64 MiB.
        tm = 512 if vmem_cap >= (96 << 20) else 256
    return _ffn_jit(x, w1, b1, g1, be1, w2, b2, g2, be2,
                    tm=int(tm), mxu_dtype=mxu_dtype,
                    single_buffer_params=bool(single_buffer_params),
                    exact_gelu=bool(exact_gelu), vmem_cap=int(vmem_cap))


def _reference(x, w1, b1, g1, be1, w2, b2, g2, be2):
    def ln(v, g, b):
        mu = jnp.mean(v, axis=-1, keepdims=True)
        var = jnp.mean((v - mu) ** 2, axis=-1, keepdims=True)
        return (v - mu) * lax.rsqrt(var + _EPS) * g + b

    h = x @ w1 + b1
    h = ln(h, g1, be1)
    h = 0.5 * h * (1.0 + lax.erf(h * _INV_SQRT2))
    y = h @ w2 + b2
    return ln(y, g2, be2)


if __name__ == "__main__":
    # Small shapes consistent with the module: (batch, seq, input_dim).
    # seq=9 makes batch*seq=18 (not a multiple of the row tile) to exercise
    # the padding + grid_m>=2 paths.
    batch, seq, input_dim, ff_dim = 2, 9, 128, 256

    key = jax.random.PRNGKey(0)
    kx, kw1, kb1, kw2, kb2 = jax.random.split(key, 5)

    x = jax.random.uniform(kx, (batch, seq, input_dim), dtype=jnp.float32)

    # Deterministic parameter init (PyTorch-style uniform bounds; synthetic).
    lim1 = 1.0 / (input_dim ** 0.5)
    lim2 = 1.0 / (ff_dim ** 0.5)
    w1 = jax.random.uniform(kw1, (input_dim, ff_dim), jnp.float32, -lim1, lim1)
    b1 = jax.random.uniform(kb1, (1, ff_dim), jnp.float32, -lim1, lim1)
    w2 = jax.random.uniform(kw2, (ff_dim, input_dim), jnp.float32, -lim2, lim2)
    b2 = jax.random.uniform(kb2, (1, input_dim), jnp.float32, -lim2, lim2)
    # LayerNorm defaults: weight=1, bias=0
    g1 = jnp.ones((1, ff_dim), jnp.float32)
    be1 = jnp.zeros((1, ff_dim), jnp.float32)
    g2 = jnp.ones((1, input_dim), jnp.float32)
    be2 = jnp.zeros((1, input_dim), jnp.float32)

    ref = _reference(x.reshape(-1, input_dim), w1, b1, g1, be1,
                     w2, b2, g2, be2).reshape(batch, seq, input_dim)

    def _run(w1_in, w2_in, mxu_dtype, single_buffer, exact_gelu):
        out = feed_forward_network(x, w1_in, b1, g1, be1, w2_in, b2, g2, be2,
                                   mxu_dtype=mxu_dtype,
                                   single_buffer_params=single_buffer,
                                   exact_gelu=exact_gelu)
        return jax.block_until_ready(out)

    # f32 MXU path, exact erf GELU: matches the module semantics.
    try:
        single_buffer = True
        out_f32 = _run(w1, w2, jnp.float32, single_buffer, True)
    except Exception:
        # Fallback if this jax build rejects single-buffered constant specs.
        single_buffer = False
        out_f32 = _run(w1, w2, jnp.float32, single_buffer, True)

    assert out_f32.shape == (batch, seq, input_dim)
    assert jnp.allclose(out_f32, ref, atol=1e-4, rtol=1e-4)

    # bf16 MXU operands (v6e/v7x perf path): weights pre-cast ONCE outside the
    # kernel call (avoids the per-call HBM cast pass), f32 accumulation/LN.
    w1_bf16 = w1.astype(jnp.bfloat16)
    w2_bf16 = w2.astype(jnp.bfloat16)
    out_bf16 = _run(w1_bf16, w2_bf16, jnp.bfloat16, single_buffer, True)
    assert out_bf16.shape == (batch, seq, input_dim)
    assert jnp.allclose(out_bf16, ref, atol=5e-2, rtol=5e-2)

    # tanh-GELU variant (EUP path; flag-gated since it is not bit-identical
    # to torch's default erf GELU).
    out_tanh = _run(w1_bf16, w2_bf16, jnp.bfloat16, single_buffer, False)
    assert out_tanh.shape == (batch, seq, input_dim)
    assert jnp.allclose(out_tanh, ref, atol=5e-2, rtol=5e-2)

    print("KERNEL_OK")
</pallas_src>

<mosaic_0001>
module attributes {stable_mosaic.version = 11 : i64} {
  func.func @_ffn_kernel(%arg0: i32, %arg1: memref<16x128xf32, #tpu.memory_space<vmem>>, %arg2: memref<128x256xf32, #tpu.memory_space<vmem>>, %arg3: memref<1x256xf32, #tpu.memory_space<vmem>>, %arg4: memref<1x256xf32, #tpu.memory_space<vmem>>, %arg5: memref<1x256xf32, #tpu.memory_space<vmem>>, %arg6: memref<256x128xf32, #tpu.memory_space<vmem>>, %arg7: memref<1x128xf32, #tpu.memory_space<vmem>>, %arg8: memref<1x128xf32, #tpu.memory_space<vmem>>, %arg9: memref<1x128xf32, #tpu.memory_space<vmem>>, %arg10: memref<16x128xf32, #tpu.memory_space<vmem>>) attributes {dimension_semantics = [#tpu.dimension_semantics<parallel>], iteration_bounds = array<i64: 2>, scalar_prefetch = 0 : i64, scratch_operands = 0 : i64, tpu.core_type = #tpu.core_type<tc>, window_params = [{transform_indices = @transform_0, window_bounds = array<i64: 16, 128>}, {pipeline_mode = #tpu.pipeline_mode<synchronous>, transform_indices = @transform_1, window_bounds = array<i64: 128, 256>}, {pipeline_mode = #tpu.pipeline_mode<synchronous>, transform_indices = @transform_2, window_bounds = array<i64: 1, 256>}, {pipeline_mode = #tpu.pipeline_mode<synchronous>, transform_indices = @transform_3, window_bounds = array<i64: 1, 256>}, {pipeline_mode = #tpu.pipeline_mode<synchronous>, transform_indices = @transform_4, window_bounds = array<i64: 1, 256>}, {pipeline_mode = #tpu.pipeline_mode<synchronous>, transform_indices = @transform_5, window_bounds = array<i64: 256, 128>}, {pipeline_mode = #tpu.pipeline_mode<synchronous>, transform_indices = @transform_6, window_bounds = array<i64: 1, 128>}, {pipeline_mode = #tpu.pipeline_mode<synchronous>, transform_indices = @transform_7, window_bounds = array<i64: 1, 128>}, {pipeline_mode = #tpu.pipeline_mode<synchronous>, transform_indices = @transform_8, window_bounds = array<i64: 1, 128>}, {transform_indices = @transform_9, window_bounds = array<i64: 16, 128>}]} {
    %c0 = arith.constant 0 : index
    %c0_0 = arith.constant 0 : index
    %0 = vector.load %arg3[%c0, %c0_0] : memref<1x256xf32, #tpu.memory_space<vmem>>, vector<1x256xf32>
    %c0_1 = arith.constant 0 : index
    %c0_2 = arith.constant 0 : index
    %1 = vector.load %arg4[%c0_1, %c0_2] : memref<1x256xf32, #tpu.memory_space<vmem>>, vector<1x256xf32>
    %c0_3 = arith.constant 0 : index
    %c0_4 = arith.constant 0 : index
    %2 = vector.load %arg5[%c0_3, %c0_4] : memref<1x256xf32, #tpu.memory_space<vmem>>, vector<1x256xf32>
    %c0_5 = arith.constant 0 : index
    %c0_6 = arith.constant 0 : index
    %3 = vector.load %arg7[%c0_5, %c0_6] : memref<1x128xf32, #tpu.memory_space<vmem>>, vector<1x128xf32>
    %c0_7 = arith.constant 0 : index
    %c0_8 = arith.constant 0 : index
    %4 = vector.load %arg8[%c0_7, %c0_8] : memref<1x128xf32, #tpu.memory_space<vmem>>, vector<1x128xf32>
    %c0_9 = arith.constant 0 : index
    %c0_10 = arith.constant 0 : index
    %5 = vector.load %arg9[%c0_9, %c0_10] : memref<1x128xf32, #tpu.memory_space<vmem>>, vector<1x128xf32>
    %c0_11 = arith.constant 0 : index
    %c0_12 = arith.constant 0 : index
    %6 = vector.load %arg2[%c0_11, %c0_12] : memref<128x256xf32, #tpu.memory_space<vmem>>, vector<128x256xf32>
    %c0_13 = arith.constant 0 : index
    %c0_14 = arith.constant 0 : index
    %7 = vector.load %arg6[%c0_13, %c0_14] : memref<256x128xf32, #tpu.memory_space<vmem>>, vector<256x128xf32>
    %c0_i32 = arith.constant 0 : i32
    %c8_i32 = arith.constant 8 : i32
    %8 = arith.muli %c0_i32, %c8_i32 : i32
    %9 = tpu.assume_multiple %8, 8 : i32
    %10 = arith.index_cast %9 : i32 to index
    %c0_15 = arith.constant 0 : index
    %11 = vector.load %arg1[%10, %c0_15] : memref<16x128xf32, #tpu.memory_space<vmem>>, vector<8x128xf32>
    %cst = arith.constant dense<0.000000e+00> : vector<8x256xf32>
    %12 = tpu.matmul %11, %6, %cst {dimension_numbers = #tpu.dot_dimension_numbers<[1], [0], [0], [1], [0, 0, 1, 1], [], []>} : vector<8x128xf32>, vector<128x256xf32>, vector<8x256xf32> -> vector<8x256xf32>
    %13 = vector.broadcast %0 : vector<1x256xf32> to vector<8x256xf32>
    %14 = arith.addf %12, %13 : vector<8x256xf32>
    %cst_16 = arith.constant dense<0.000000e+00> : vector<8xf32>
    %15 = vector.multi_reduction <add>, %14, %cst_16 [1] : vector<8x256xf32> to vector<8xf32>
    %16 = vector.shape_cast %15 : vector<8xf32> to vector<8x1xf32>
    %cst_17 = arith.constant 3.906250e-03 : f32
    %17 = vector.broadcast %cst_17 : f32 to vector<8x1xf32>
    %18 = arith.mulf %16, %17 : vector<8x1xf32>
    %19 = arith.mulf %14, %14 : vector<8x256xf32>
    %cst_18 = arith.constant dense<0.000000e+00> : vector<8xf32>
    %20 = vector.multi_reduction <add>, %19, %cst_18 [1] : vector<8x256xf32> to vector<8xf32>
    %21 = vector.shape_cast %20 : vector<8xf32> to vector<8x1xf32>
    %cst_19 = arith.constant 3.906250e-03 : f32
    %22 = vector.broadcast %cst_19 : f32 to vector<8x1xf32>
    %23 = arith.mulf %21, %22 : vector<8x1xf32>
    %24 = arith.mulf %18, %18 : vector<8x1xf32>
    %25 = arith.subf %23, %24 : vector<8x1xf32>
    %cst_20 = arith.constant 0.000000e+00 : f32
    %26 = vector.broadcast %cst_20 : f32 to vector<8x1xf32>
    %27 = arith.maximumf %25, %26 : vector<8x1xf32>
    %28 = vector.broadcast %18 : vector<8x1xf32> to vector<8x256xf32>
    %29 = arith.subf %14, %28 : vector<8x256xf32>
    %cst_21 = arith.constant 9.99999974E-6 : f32
    %30 = vector.broadcast %cst_21 : f32 to vector<8x1xf32>
    %31 = arith.addf %27, %30 : vector<8x1xf32>
    %32 = math.rsqrt %31 : vector<8x1xf32>
    %33 = vector.broadcast %32 : vector<8x1xf32> to vector<8x256xf32>
    %34 = arith.mulf %29, %33 : vector<8x256xf32>
    %35 = vector.broadcast %1 : vector<1x256xf32> to vector<8x256xf32>
    %36 = arith.mulf %34, %35 : vector<8x256xf32>
    %37 = vector.broadcast %2 : vector<1x256xf32> to vector<8x256xf32>
    %38 = arith.addf %36, %37 : vector<8x256xf32>
    %cst_22 = arith.constant 5.000000e-01 : f32
    %39 = vector.broadcast %cst_22 : f32 to vector<8x256xf32>
    %40 = arith.mulf %39, %38 : vector<8x256xf32>
    %cst_23 = arith.constant 0.707106769 : f32
    %41 = vector.broadcast %cst_23 : f32 to vector<8x256xf32>
    %42 = arith.mulf %38, %41 : vector<8x256xf32>
    %43 = math.erf %42 : vector<8x256xf32>
    %cst_24 = arith.constant 1.000000e+00 : f32
    %44 = vector.broadcast %cst_24 : f32 to vector<8x256xf32>
    %45 = arith.addf %44, %43 : vector<8x256xf32>
    %46 = arith.mulf %40, %45 : vector<8x256xf32>
    %cst_25 = arith.constant dense<0.000000e+00> : vector<8x128xf32>
    %47 = tpu.matmul %46, %7, %cst_25 {dimension_numbers = #tpu.dot_dimension_numbers<[1], [0], [0], [1], [0, 0, 1, 1], [], []>} : vector<8x256xf32>, vector<256x128xf32>, vector<8x128xf32> -> vector<8x128xf32>
    %48 = vector.broadcast %3 : vector<1x128xf32> to vector<8x128xf32>
    %49 = arith.addf %47, %48 : vector<8x128xf32>
    %cst_26 = arith.constant dense<0.000000e+00> : vector<8xf32>
    %50 = vector.multi_reduction <add>, %49, %cst_26 [1] : vector<8x128xf32> to vector<8xf32>
    %51 = vector.shape_cast %50 : vector<8xf32> to vector<8x1xf32>
    %cst_27 = arith.constant 7.812500e-03 : f32
    %52 = vector.broadcast %cst_27 : f32 to vector<8x1xf32>
    %53 = arith.mulf %51, %52 : vector<8x1xf32>
    %54 = arith.mulf %49, %49 : vector<8x128xf32>
    %cst_28 = arith.constant dense<0.000000e+00> : vector<8xf32>
    %55 = vector.multi_reduction <add>, %54, %cst_28 [1] : vector<8x128xf32> to vector<8xf32>
    %56 = vector.shape_cast %55 : vector<8xf32> to vector<8x1xf32>
    %cst_29 = arith.constant 7.812500e-03 : f32
    %57 = vector.broadcast %cst_29 : f32 to vector<8x1xf32>
    %58 = arith.mulf %56, %57 : vector<8x1xf32>
    %59 = arith.mulf %53, %53 : vector<8x1xf32>
    %60 = arith.subf %58, %59 : vector<8x1xf32>
    %cst_30 = arith.constant 0.000000e+00 : f32
    %61 = vector.broadcast %cst_30 : f32 to vector<8x1xf32>
    %62 = arith.maximumf %60, %61 : vector<8x1xf32>
    %63 = vector.broadcast %53 : vector<8x1xf32> to vector<8x128xf32>
    %64 = arith.subf %49, %63 : vector<8x128xf32>
    %cst_31 = arith.constant 9.99999974E-6 : f32
    %65 = vector.broadcast %cst_31 : f32 to vector<8x1xf32>
    %66 = arith.addf %62, %65 : vector<8x1xf32>
    %67 = math.rsqrt %66 : vector<8x1xf32>
    %68 = vector.broadcast %67 : vector<8x1xf32> to vector<8x128xf32>
    %69 = arith.mulf %64, %68 : vector<8x128xf32>
    %70 = vector.broadcast %4 : vector<1x128xf32> to vector<8x128xf32>
    %71 = arith.mulf %69, %70 : vector<8x128xf32>
    %72 = vector.broadcast %5 : vector<1x128xf32> to vector<8x128xf32>
    %73 = arith.addf %71, %72 : vector<8x128xf32>
    %74 = arith.index_cast %9 : i32 to index
    %c0_32 = arith.constant 0 : index
    %75 = vector.load %arg10[%74, %c0_32] : memref<16x128xf32, #tpu.memory_space<vmem>>, vector<8x128xf32>
    tpu.vector_store %arg10[%74, %c0_32], %73 {strides = array<i32>} : memref<16x128xf32, #tpu.memory_space<vmem>>, vector<8x128xf32>,
    %c1_i32 = arith.constant 1 : i32
    %c8_i32_33 = arith.constant 8 : i32
    %76 = arith.muli %c1_i32, %c8_i32_33 : i32
    %77 = tpu.assume_multiple %76, 8 : i32
    %78 = arith.index_cast %77 : i32 to index
    %c0_34 = arith.constant 0 : index
    %79 = vector.load %arg1[%78, %c0_34] : memref<16x128xf32, #tpu.memory_space<vmem>>, vector<8x128xf32>
    %cst_35 = arith.constant dense<0.000000e+00> : vector<8x256xf32>
    %80 = tpu.matmul %79, %6, %cst_35 {dimension_numbers = #tpu.dot_dimension_numbers<[1], [0], [0], [1], [0, 0, 1, 1], [], []>} : vector<8x128xf32>, vector<128x256xf32>, vector<8x256xf32> -> vector<8x256xf32>
    %81 = vector.broadcast %0 : vector<1x256xf32> to vector<8x256xf32>
    %82 = arith.addf %80, %81 : vector<8x256xf32>
    %cst_36 = arith.constant dense<0.000000e+00> : vector<8xf32>
    %83 = vector.multi_reduction <add>, %82, %cst_36 [1] : vector<8x256xf32> to vector<8xf32>
    %84 = vector.shape_cast %83 : vector<8xf32> to vector<8x1xf32>
    %cst_37 = arith.constant 3.906250e-03 : f32
    %85 = vector.broadcast %cst_37 : f32 to vector<8x1xf32>
    %86 = arith.mulf %84, %85 : vector<8x1xf32>
    %87 = arith.mulf %82, %82 : vector<8x256xf32>
    %cst_38 = arith.constant dense<0.000000e+00> : vector<8xf32>
    %88 = vector.multi_reduction <add>, %87, %cst_38 [1] : vector<8x256xf32> to vector<8xf32>
    %89 = vector.shape_cast %88 : vector<8xf32> to vector<8x1xf32>
    %cst_39 = arith.constant 3.906250e-03 : f32
    %90 = vector.broadcast %cst_39 : f32 to vector<8x1xf32>
    %91 = arith.mulf %89, %90 : vector<8x1xf32>
    %92 = arith.mulf %86, %86 : vector<8x1xf32>
    %93 = arith.subf %91, %92 : vector<8x1xf32>
    %cst_40 = arith.constant 0.000000e+00 : f32
    %94 = vector.broadcast %cst_40 : f32 to vector<8x1xf32>
    %95 = arith.maximumf %93, %94 : vector<8x1xf32>
    %96 = vector.broadcast %86 : vector<8x1xf32> to vector<8x256xf32>
    %97 = arith.subf %82, %96 : vector<8x256xf32>
    %cst_41 = arith.constant 9.99999974E-6 : f32
    %98 = vector.broadcast %cst_41 : f32 to vector<8x1xf32>
    %99 = arith.addf %95, %98 : vector<8x1xf32>
    %100 = math.rsqrt %99 : vector<8x1xf32>
    %101 = vector.broadcast %100 : vector<8x1xf32> to vector<8x256xf32>
    %102 = arith.mulf %97, %101 : vector<8x256xf32>
    %103 = vector.broadcast %1 : vector<1x256xf32> to vector<8x256xf32>
    %104 = arith.mulf %102, %103 : vector<8x256xf32>
    %105 = vector.broadcast %2 : vector<1x256xf32> to vector<8x256xf32>
    %106 = arith.addf %104, %105 : vector<8x256xf32>
    %cst_42 = arith.constant 5.000000e-01 : f32
    %107 = vector.broadcast %cst_42 : f32 to vector<8x256xf32>
    %108 = arith.mulf %107, %106 : vector<8x256xf32>
    %cst_43 = arith.constant 0.707106769 : f32
    %109 = vector.broadcast %cst_43 : f32 to vector<8x256xf32>
    %110 = arith.mulf %106, %109 : vector<8x256xf32>
    %111 = math.erf %110 : vector<8x256xf32>
    %cst_44 = arith.constant 1.000000e+00 : f32
    %112 = vector.broadcast %cst_44 : f32 to vector<8x256xf32>
    %113 = arith.addf %112, %111 : vector<8x256xf32>
    %114 = arith.mulf %108, %113 : vector<8x256xf32>
    %cst_45 = arith.constant dense<0.000000e+00> : vector<8x128xf32>
    %115 = tpu.matmul %114, %7, %cst_45 {dimension_numbers = #tpu.dot_dimension_numbers<[1], [0], [0], [1], [0, 0, 1, 1], [], []>} : vector<8x256xf32>, vector<256x128xf32>, vector<8x128xf32> -> vector<8x128xf32>
    %116 = vector.broadcast %3 : vector<1x128xf32> to vector<8x128xf32>
    %117 = arith.addf %115, %116 : vector<8x128xf32>
    %cst_46 = arith.constant dense<0.000000e+00> : vector<8xf32>
    %118 = vector.multi_reduction <add>, %117, %cst_46 [1] : vector<8x128xf32> to vector<8xf32>
    %119 = vector.shape_cast %118 : vector<8xf32> to vector<8x1xf32>
    %cst_47 = arith.constant 7.812500e-03 : f32
    %120 = vector.broadcast %cst_47 : f32 to vector<8x1xf32>
    %121 = arith.mulf %119, %120 : vector<8x1xf32>
    %122 = arith.mulf %117, %117 : vector<8x128xf32>
    %cst_48 = arith.constant dense<0.000000e+00> : vector<8xf32>
    %123 = vector.multi_reduction <add>, %122, %cst_48 [1] : vector<8x128xf32> to vector<8xf32>
    %124 = vector.shape_cast %123 : vector<8xf32> to vector<8x1xf32>
    %cst_49 = arith.constant 7.812500e-03 : f32
    %125 = vector.broadcast %cst_49 : f32 to vector<8x1xf32>
    %126 = arith.mulf %124, %125 : vector<8x1xf32>
    %127 = arith.mulf %121, %121 : vector<8x1xf32>
    %128 = arith.subf %126, %127 : vector<8x1xf32>
    %cst_50 = arith.constant 0.000000e+00 : f32
    %129 = vector.broadcast %cst_50 : f32 to vector<8x1xf32>
    %130 = arith.maximumf %128, %129 : vector<8x1xf32>
    %131 = vector.broadcast %121 : vector<8x1xf32> to vector<8x128xf32>
    %132 = arith.subf %117, %131 : vector<8x128xf32>
    %cst_51 = arith.constant 9.99999974E-6 : f32
    %133 = vector.broadcast %cst_51 : f32 to vector<8x1xf32>
    %134 = arith.addf %130, %133 : vector<8x1xf32>
    %135 = math.rsqrt %134 : vector<8x1xf32>
    %136 = vector.broadcast %135 : vector<8x1xf32> to vector<8x128xf32>
    %137 = arith.mulf %132, %136 : vector<8x128xf32>
    %138 = vector.broadcast %4 : vector<1x128xf32> to vector<8x128xf32>
    %139 = arith.mulf %137, %138 : vector<8x128xf32>
    %140 = vector.broadcast %5 : vector<1x128xf32> to vector<8x128xf32>
    %141 = arith.addf %139, %140 : vector<8x128xf32>
    %142 = arith.index_cast %77 : i32 to index
    %c0_52 = arith.constant 0 : index
    %143 = vector.load %arg10[%142, %c0_52] : memref<16x128xf32, #tpu.memory_space<vmem>>, vector<8x128xf32>
    tpu.vector_store %arg10[%142, %c0_52], %141 {strides = array<i32>} : memref<16x128xf32, #tpu.memory_space<vmem>>, vector<8x128xf32>,
    %c2_i32 = arith.constant 2 : i32
    return
  }
  func.func @transform_0(%arg0: i32) -> (i32, i32) {
    %c0_i32 = arith.constant 0 : i32
    %c0_i32_0 = arith.constant 0 : i32
    return %arg0, %c0_i32 : i32, i32
  }
  func.func @transform_1(%arg0: i32) -> (i32, i32) {
    %c0_i32 = arith.constant 0 : i32
    %c0_i32_0 = arith.constant 0 : i32
    %c0_i32_1 = arith.constant 0 : i32
    return %c0_i32, %c0_i32_0 : i32, i32
  }
  func.func @transform_2(%arg0: i32) -> (i32, i32) {
    %c0_i32 = arith.constant 0 : i32
    %c0_i32_0 = arith.constant 0 : i32
    %c0_i32_1 = arith.constant 0 : i32
    return %c0_i32, %c0_i32_0 : i32, i32
  }
  func.func @transform_3(%arg0: i32) -> (i32, i32) {
    %c0_i32 = arith.constant 0 : i32
    %c0_i32_0 = arith.constant 0 : i32
    %c0_i32_1 = arith.constant 0 : i32
    return %c0_i32, %c0_i32_0 : i32, i32
  }
  func.func @transform_4(%arg0: i32) -> (i32, i32) {
    %c0_i32 = arith.constant 0 : i32
    %c0_i32_0 = arith.constant 0 : i32
    %c0_i32_1 = arith.constant 0 : i32
    return %c0_i32, %c0_i32_0 : i32, i32
  }
  func.func @transform_5(%arg0: i32) -> (i32, i32) {
    %c0_i32 = arith.constant 0 : i32
    %c0_i32_0 = arith.constant 0 : i32
    %c0_i32_1 = arith.constant 0 : i32
    return %c0_i32, %c0_i32_0 : i32, i32
  }
  func.func @transform_6(%arg0: i32) -> (i32, i32) {
    %c0_i32 = arith.constant 0 : i32
    %c0_i32_0 = arith.constant 0 : i32
    %c0_i32_1 = arith.constant 0 : i32
    return %c0_i32, %c0_i32_0 : i32, i32
  }
  func.func @transform_7(%arg0: i32) -> (i32, i32) {
    %c0_i32 = arith.constant 0 : i32
    %c0_i32_0 = arith.constant 0 : i32
    %c0_i32_1 = arith.constant 0 : i32
    return %c0_i32, %c0_i32_0 : i32, i32
  }
  func.func @transform_8(%arg0: i32) -> (i32, i32) {
    %c0_i32 = arith.constant 0 : i32
    %c0_i32_0 = arith.constant 0 : i32
    %c0_i32_1 = arith.constant 0 : i32
    return %c0_i32, %c0_i32_0 : i32, i32
  }
  func.func @transform_9(%arg0: i32) -> (i32, i32) {
    %c0_i32 = arith.constant 0 : i32
    %c0_i32_0 = arith.constant 0 : i32
    return %arg0, %c0_i32 : i32, i32
  }
}

module attributes {stable_mosaic.version = 11 : i64} {
  func.func @_ffn_kernel(%arg0: i32, %arg1: memref<16x128xf32, #tpu.memory_space<vmem>>, %arg2: memref<128x256xf32, #tpu.memory_space<vmem>>, %arg3: memref<1x256xf32, #tpu.memory_space<vmem>>, %arg4: memref<1x256xf32, #tpu.memory_space<vmem>>, %arg5: memref<1x256xf32, #tpu.memory_space<vmem>>, %arg6: memref<256x128xf32, #tpu.memory_space<vmem>>, %arg7: memref<1x128xf32, #tpu.memory_space<vmem>>, %arg8: memref<1x128xf32, #tpu.memory_space<vmem>>, %arg9: memref<1x128xf32, #tpu.memory_space<vmem>>, %arg10: memref<16x128xf32, #tpu.memory_space<vmem>>) attributes {dimension_semantics = [#tpu.dimension_semantics<parallel>], iteration_bounds = array<i64: 2>, scalar_prefetch = 0 : i64, scratch_operands = 0 : i64, tpu.core_type = #tpu.core_type<tc>, window_params = [{transform_indices = @transform_0, window_bounds = array<i64: 16, 128>}, {pipeline_mode = #tpu.pipeline_mode<synchronous>, transform_indices = @transform_1, window_bounds = array<i64: 128, 256>}, {pipeline_mode = #tpu.pipeline_mode<synchronous>, transform_indices = @transform_2, window_bounds = array<i64: 1, 256>}, {pipeline_mode = #tpu.pipeline_mode<synchronous>, transform_indices = @transform_3, window_bounds = array<i64: 1, 256>}, {pipeline_mode = #tpu.pipeline_mode<synchronous>, transform_indices = @transform_4, window_bounds = array<i64: 1, 256>}, {pipeline_mode = #tpu.pipeline_mode<synchronous>, transform_indices = @transform_5, window_bounds = array<i64: 256, 128>}, {pipeline_mode = #tpu.pipeline_mode<synchronous>, transform_indices = @transform_6, window_bounds = array<i64: 1, 128>}, {pipeline_mode = #tpu.pipeline_mode<synchronous>, transform_indices = @transform_7, window_bounds = array<i64: 1, 128>}, {pipeline_mode = #tpu.pipeline_mode<synchronous>, transform_indices = @transform_8, window_bounds = array<i64: 1, 128>}, {transform_indices = @transform_9, window_bounds = array<i64: 16, 128>}]} {
    %c0 = arith.constant 0 : index
    %c0_0 = arith.constant 0 : index
    %0 = vector.load %arg3[%c0, %c0_0] : memref<1x256xf32, #tpu.memory_space<vmem>>, vector<1x256xf32>
    %c0_1 = arith.constant 0 : index
    %c0_2 = arith.constant 0 : index
    %1 = vector.load %arg4[%c0_1, %c0_2] : memref<1x256xf32, #tpu.memory_space<vmem>>, vector<1x256xf32>
    %c0_3 = arith.constant 0 : index
    %c0_4 = arith.constant 0 : index
    %2 = vector.load %arg5[%c0_3, %c0_4] : memref<1x256xf32, #tpu.memory_space<vmem>>, vector<1x256xf32>
    %c0_5 = arith.constant 0 : index
    %c0_6 = arith.constant 0 : index
    %3 = vector.load %arg7[%c0_5, %c0_6] : memref<1x128xf32, #tpu.memory_space<vmem>>, vector<1x128xf32>
    %c0_7 = arith.constant 0 : index
    %c0_8 = arith.constant 0 : index
    %4 = vector.load %arg8[%c0_7, %c0_8] : memref<1x128xf32, #tpu.memory_space<vmem>>, vector<1x128xf32>
    %c0_9 = arith.constant 0 : index
    %c0_10 = arith.constant 0 : index
    %5 = vector.load %arg9[%c0_9, %c0_10] : memref<1x128xf32, #tpu.memory_space<vmem>>, vector<1x128xf32>
    %c0_11 = arith.constant 0 : index
    %c0_12 = arith.constant 0 : index
    %6 = vector.load %arg2[%c0_11, %c0_12] : memref<128x256xf32, #tpu.memory_space<vmem>>, vector<128x256xf32>
    %c0_13 = arith.constant 0 : index
    %c0_14 = arith.constant 0 : index
    %7 = vector.load %arg6[%c0_13, %c0_14] : memref<256x128xf32, #tpu.memory_space<vmem>>, vector<256x128xf32>
    %c0_i32 = arith.constant 0 : i32
    %c8_i32 = arith.constant 8 : i32
    %8 = arith.muli %c0_i32, %c8_i32 : i32
    %9 = tpu.assume_multiple %8, 8 : i32
    %10 = arith.index_cast %9 : i32 to index
    %c0_15 = arith.constant 0 : index
    %11 = vector.load %arg1[%10, %c0_15] : memref<16x128xf32, #tpu.memory_space<vmem>>, vector<8x128xf32>
    %cst = arith.constant dense<0.000000e+00> : vector<8x256xf32>
    %12 = tpu.matmul %11, %6, %cst {dimension_numbers = #tpu.dot_dimension_numbers<[1], [0], [0], [1], [0, 0, 1, 1], [], []>} : vector<8x128xf32>, vector<128x256xf32>, vector<8x256xf32> -> vector<8x256xf32>
    %13 = vector.broadcast %0 : vector<1x256xf32> to vector<8x256xf32>
    %14 = arith.addf %12, %13 : vector<8x256xf32>
    %cst_16 = arith.constant dense<0.000000e+00> : vector<8xf32>
    %15 = vector.multi_reduction <add>, %14, %cst_16 [1] : vector<8x256xf32> to vector<8xf32>
    %16 = vector.shape_cast %15 : vector<8xf32> to vector<8x1xf32>
    %cst_17 = arith.constant 3.906250e-03 : f32
    %17 = vector.broadcast %cst_17 : f32 to vector<8x1xf32>
    %18 = arith.mulf %16, %17 : vector<8x1xf32>
    %19 = arith.mulf %14, %14 : vector<8x256xf32>
    %cst_18 = arith.constant dense<0.000000e+00> : vector<8xf32>
    %20 = vector.multi_reduction <add>, %19, %cst_18 [1] : vector<8x256xf32> to vector<8xf32>
    %21 = vector.shape_cast %20 : vector<8xf32> to vector<8x1xf32>
    %cst_19 = arith.constant 3.906250e-03 : f32
    %22 = vector.broadcast %cst_19 : f32 to vector<8x1xf32>
    %23 = arith.mulf %21, %22 : vector<8x1xf32>
    %24 = arith.mulf %18, %18 : vector<8x1xf32>
    %25 = arith.subf %23, %24 : vector<8x1xf32>
    %cst_20 = arith.constant 0.000000e+00 : f32
    %26 = vector.broadcast %cst_20 : f32 to vector<8x1xf32>
    %27 = arith.maximumf %25, %26 : vector<8x1xf32>
    %28 = vector.broadcast %18 : vector<8x1xf32> to vector<8x256xf32>
    %29 = arith.subf %14, %28 : vector<8x256xf32>
    %cst_21 = arith.constant 9.99999974E-6 : f32
    %30 = vector.broadcast %cst_21 : f32 to vector<8x1xf32>
    %31 = arith.addf %27, %30 : vector<8x1xf32>
    %32 = math.rsqrt %31 : vector<8x1xf32>
    %33 = vector.broadcast %32 : vector<8x1xf32> to vector<8x256xf32>
    %34 = arith.mulf %29, %33 : vector<8x256xf32>
    %35 = vector.broadcast %1 : vector<1x256xf32> to vector<8x256xf32>
    %36 = arith.mulf %34, %35 : vector<8x256xf32>
    %37 = vector.broadcast %2 : vector<1x256xf32> to vector<8x256xf32>
    %38 = arith.addf %36, %37 : vector<8x256xf32>
    %cst_22 = arith.constant 5.000000e-01 : f32
    %39 = vector.broadcast %cst_22 : f32 to vector<8x256xf32>
    %40 = arith.mulf %39, %38 : vector<8x256xf32>
    %cst_23 = arith.constant 0.707106769 : f32
    %41 = vector.broadcast %cst_23 : f32 to vector<8x256xf32>
    %42 = arith.mulf %38, %41 : vector<8x256xf32>
    %43 = math.erf %42 : vector<8x256xf32>
    %cst_24 = arith.constant 1.000000e+00 : f32
    %44 = vector.broadcast %cst_24 : f32 to vector<8x256xf32>
    %45 = arith.addf %44, %43 : vector<8x256xf32>
    %46 = arith.mulf %40, %45 : vector<8x256xf32>
    %cst_25 = arith.constant dense<0.000000e+00> : vector<8x128xf32>
    %47 = tpu.matmul %46, %7, %cst_25 {dimension_numbers = #tpu.dot_dimension_numbers<[1], [0], [0], [1], [0, 0, 1, 1], [], []>} : vector<8x256xf32>, vector<256x128xf32>, vector<8x128xf32> -> vector<8x128xf32>
    %48 = vector.broadcast %3 : vector<1x128xf32> to vector<8x128xf32>
    %49 = arith.addf %47, %48 : vector<8x128xf32>
    %cst_26 = arith.constant dense<0.000000e+00> : vector<8xf32>
    %50 = vector.multi_reduction <add>, %49, %cst_26 [1] : vector<8x128xf32> to vector<8xf32>
    %51 = vector.shape_cast %50 : vector<8xf32> to vector<8x1xf32>
    %cst_27 = arith.constant 7.812500e-03 : f32
    %52 = vector.broadcast %cst_27 : f32 to vector<8x1xf32>
    %53 = arith.mulf %51, %52 : vector<8x1xf32>
    %54 = arith.mulf %49, %49 : vector<8x128xf32>
    %cst_28 = arith.constant dense<0.000000e+00> : vector<8xf32>
    %55 = vector.multi_reduction <add>, %54, %cst_28 [1] : vector<8x128xf32> to vector<8xf32>
    %56 = vector.shape_cast %55 : vector<8xf32> to vector<8x1xf32>
    %cst_29 = arith.constant 7.812500e-03 : f32
    %57 = vector.broadcast %cst_29 : f32 to vector<8x1xf32>
    %58 = arith.mulf %56, %57 : vector<8x1xf32>
    %59 = arith.mulf %53, %53 : vector<8x1xf32>
    %60 = arith.subf %58, %59 : vector<8x1xf32>
    %cst_30 = arith.constant 0.000000e+00 : f32
    %61 = vector.broadcast %cst_30 : f32 to vector<8x1xf32>
    %62 = arith.maximumf %60, %61 : vector<8x1xf32>
    %63 = vector.broadcast %53 : vector<8x1xf32> to vector<8x128xf32>
    %64 = arith.subf %49, %63 : vector<8x128xf32>
    %cst_31 = arith.constant 9.99999974E-6 : f32
    %65 = vector.broadcast %cst_31 : f32 to vector<8x1xf32>
    %66 = arith.addf %62, %65 : vector<8x1xf32>
    %67 = math.rsqrt %66 : vector<8x1xf32>
    %68 = vector.broadcast %67 : vector<8x1xf32> to vector<8x128xf32>
    %69 = arith.mulf %64, %68 : vector<8x128xf32>
    %70 = vector.broadcast %4 : vector<1x128xf32> to vector<8x128xf32>
    %71 = arith.mulf %69, %70 : vector<8x128xf32>
    %72 = vector.broadcast %5 : vector<1x128xf32> to vector<8x128xf32>
    %73 = arith.addf %71, %72 : vector<8x128xf32>
    %74 = arith.index_cast %9 : i32 to index
    %c0_32 = arith.constant 0 : index
    %75 = vector.load %arg10[%74, %c0_32] : memref<16x128xf32, #tpu.memory_space<vmem>>, vector<8x128xf32>
    tpu.vector_store %arg10[%74, %c0_32], %73 {strides = array<i32>} : memref<16x128xf32, #tpu.memory_space<vmem>>, vector<8x128xf32>,
    %c1_i32 = arith.constant 1 : i32
    %c8_i32_33 = arith.constant 8 : i32
    %76 = arith.muli %c1_i32, %c8_i32_33 : i32
    %77 = tpu.assume_multiple %76, 8 : i32
    %78 = arith.index_cast %77 : i32 to index
    %c0_34 = arith.constant 0 : index
    %79 = vector.load %arg1[%78, %c0_34] : memref<16x128xf32, #tpu.memory_space<vmem>>, vector<8x128xf32>
    %cst_35 = arith.constant dense<0.000000e+00> : vector<8x256xf32>
    %80 = tpu.matmul %79, %6, %cst_35 {dimension_numbers = #tpu.dot_dimension_numbers<[1], [0], [0], [1], [0, 0, 1, 1], [], []>} : vector<8x128xf32>, vector<128x256xf32>, vector<8x256xf32> -> vector<8x256xf32>
    %81 = vector.broadcast %0 : vector<1x256xf32> to vector<8x256xf32>
    %82 = arith.addf %80, %81 : vector<8x256xf32>
    %cst_36 = arith.constant dense<0.000000e+00> : vector<8xf32>
    %83 = vector.multi_reduction <add>, %82, %cst_36 [1] : vector<8x256xf32> to vector<8xf32>
    %84 = vector.shape_cast %83 : vector<8xf32> to vector<8x1xf32>
    %cst_37 = arith.constant 3.906250e-03 : f32
    %85 = vector.broadcast %cst_37 : f32 to vector<8x1xf32>
    %86 = arith.mulf %84, %85 : vector<8x1xf32>
    %87 = arith.mulf %82, %82 : vector<8x256xf32>
    %cst_38 = arith.constant dense<0.000000e+00> : vector<8xf32>
    %88 = vector.multi_reduction <add>, %87, %cst_38 [1] : vector<8x256xf32> to vector<8xf32>
    %89 = vector.shape_cast %88 : vector<8xf32> to vector<8x1xf32>
    %cst_39 = arith.constant 3.906250e-03 : f32
    %90 = vector.broadcast %cst_39 : f32 to vector<8x1xf32>
    %91 = arith.mulf %89, %90 : vector<8x1xf32>
    %92 = arith.mulf %86, %86 : vector<8x1xf32>
    %93 = arith.subf %91, %92 : vector<8x1xf32>
    %cst_40 = arith.constant 0.000000e+00 : f32
    %94 = vector.broadcast %cst_40 : f32 to vector<8x1xf32>
    %95 = arith.maximumf %93, %94 : vector<8x1xf32>
    %96 = vector.broadcast %86 : vector<8x1xf32> to vector<8x256xf32>
    %97 = arith.subf %82, %96 : vector<8x256xf32>
    %cst_41 = arith.constant 9.99999974E-6 : f32
    %98 = vector.broadcast %cst_41 : f32 to vector<8x1xf32>
    %99 = arith.addf %95, %98 : vector<8x1xf32>
    %100 = math.rsqrt %99 : vector<8x1xf32>
    %101 = vector.broadcast %100 : vector<8x1xf32> to vector<8x256xf32>
    %102 = arith.mulf %97, %101 : vector<8x256xf32>
    %103 = vector.broadcast %1 : vector<1x256xf32> to vector<8x256xf32>
    %104 = arith.mulf %102, %103 : vector<8x256xf32>
    %105 = vector.broadcast %2 : vector<1x256xf32> to vector<8x256xf32>
    %106 = arith.addf %104, %105 : vector<8x256xf32>
    %cst_42 = arith.constant 5.000000e-01 : f32
    %107 = vector.broadcast %cst_42 : f32 to vector<8x256xf32>
    %108 = arith.mulf %107, %106 : vector<8x256xf32>
    %cst_43 = arith.constant 0.707106769 : f32
    %109 = vector.broadcast %cst_43 : f32 to vector<8x256xf32>
    %110 = arith.mulf %106, %109 : vector<8x256xf32>
    %111 = math.erf %110 : vector<8x256xf32>
    %cst_44 = arith.constant 1.000000e+00 : f32
    %112 = vector.broadcast %cst_44 : f32 to vector<8x256xf32>
    %113 = arith.addf %112, %111 : vector<8x256xf32>
    %114 = arith.mulf %108, %113 : vector<8x256xf32>
    %cst_45 = arith.constant dense<0.000000e+00> : vector<8x128xf32>
    %115 = tpu.matmul %114, %7, %cst_45 {dimension_numbers = #tpu.dot_dimension_numbers<[1], [0], [0], [1], [0, 0, 1, 1], [], []>} : vector<8x256xf32>, vector<256x128xf32>, vector<8x128xf32> -> vector<8x128xf32>
    %116 = vector.broadcast %3 : vector<1x128xf32> to vector<8x128xf32>
    %117 = arith.addf %115, %116 : vector<8x128xf32>
    %cst_46 = arith.constant dense<0.000000e+00> : vector<8xf32>
    %118 = vector.multi_reduction <add>, %117, %cst_46 [1] : vector<8x128xf32> to vector<8xf32>
    %119 = vector.shape_cast %118 : vector<8xf32> to vector<8x1xf32>
    %cst_47 = arith.constant 7.812500e-03 : f32
    %120 = vector.broadcast %cst_47 : f32 to vector<8x1xf32>
    %121 = arith.mulf %119, %120 : vector<8x1xf32>
    %122 = arith.mulf %117, %117 : vector<8x128xf32>
    %cst_48 = arith.constant dense<0.000000e+00> : vector<8xf32>
    %123 = vector.multi_reduction <add>, %122, %cst_48 [1] : vector<8x128xf32> to vector<8xf32>
    %124 = vector.shape_cast %123 : vector<8xf32> to vector<8x1xf32>
    %cst_49 = arith.constant 7.812500e-03 : f32
    %125 = vector.broadcast %cst_49 : f32 to vector<8x1xf32>
    %126 = arith.mulf %124, %125 : vector<8x1xf32>
    %127 = arith.mulf %121, %121 : vector<8x1xf32>
    %128 = arith.subf %126, %127 : vector<8x1xf32>
    %cst_50 = arith.constant 0.000000e+00 : f32
    %129 = vector.broadcast %cst_50 : f32 to vector<8x1xf32>
    %130 = arith.maximumf %128, %129 : vector<8x1xf32>
    %131 = vector.broadcast %121 : vector<8x1xf32> to vector<8x128xf32>
    %132 = arith.subf %117, %131 : vector<8x128xf32>
    %cst_51 = arith.constant 9.99999974E-6 : f32
    %133 = vector.broadcast %cst_51 : f32 to vector<8x1xf32>
    %134 = arith.addf %130, %133 : vector<8x1xf32>
    %135 = math.rsqrt %134 : vector<8x1xf32>
    %136 = vector.broadcast %135 : vector<8x1xf32> to vector<8x128xf32>
    %137 = arith.mulf %132, %136 : vector<8x128xf32>
    %138 = vector.broadcast %4 : vector<1x128xf32> to vector<8x128xf32>
    %139 = arith.mulf %137, %138 : vector<8x128xf32>
    %140 = vector.broadcast %5 : vector<1x128xf32> to vector<8x128xf32>
    %141 = arith.addf %139, %140 : vector<8x128xf32>
    %142 = arith.index_cast %77 : i32 to index
    %c0_52 = arith.constant 0 : index
    %143 = vector.load %arg10[%142, %c0_52] : memref<16x128xf32, #tpu.memory_space<vmem>>, vector<8x128xf32>
    tpu.vector_store %arg10[%142, %c0_52], %141 {strides = array<i32>} : memref<16x128xf32, #tpu.memory_space<vmem>>, vector<8x128xf32>,
    %c2_i32 = arith.constant 2 : i32
    return
  }
  func.func @transform_0(%arg0: i32) -> (i32, i32) {
    %c0_i32 = arith.constant 0 : i32
    %c0_i32_0 = arith.constant 0 : i32
    return %arg0, %c0_i32 : i32, i32
  }
  func.func @transform_1(%arg0: i32) -> (i32, i32) {
    %c0_i32 = arith.constant 0 : i32
    %c0_i32_0 = arith.constant 0 : i32
    %c0_i32_1 = arith.constant 0 : i32
    return %c0_i32, %c0_i32_0 : i32, i32
  }
  func.func @transform_2(%arg0: i32) -> (i32, i32) {
    %c0_i32 = arith.constant 0 : i32
    %c0_i32_0 = arith.constant 0 : i32
    %c0_i32_1 = arith.constant 0 : i32
    return %c0_i32, %c0_i32_0 : i32, i32
  }
  func.func @transform_3(%arg0: i32) -> (i32, i32) {
    %c0_i32 = arith.constant 0 : i32
    %c0_i32_0 = arith.constant 0 : i32
    %c0_i32_1 = arith.constant 0 : i32
    return %c0_i32, %c0_i32_0 : i32, i32
  }
  func.func @transform_4(%arg0: i32) -> (i32, i32) {
    %c0_i32 = arith.constant 0 : i32
    %c0_i32_0 = arith.constant 0 : i32
    %c0_i32_1 = arith.constant 0 : i32
    return %c0_i32, %c0_i32_0 : i32, i32
  }
  func.func @transform_5(%arg0: i32) -> (i32, i32) {
    %c0_i32 = arith.constant 0 : i32
    %c0_i32_0 = arith.constant 0 : i32
    %c0_i32_1 = arith.constant 0 : i32
    return %c0_i32, %c0_i32_0 : i32, i32
  }
  func.func @transform_6(%arg0: i32) -> (i32, i32) {
    %c0_i32 = arith.constant 0 : i32
    %c0_i32_0 = arith.constant 0 : i32
    %c0_i32_1 = arith.constant 0 : i32
    return %c0_i32, %c0_i32_0 : i32, i32
  }
  func.func @transform_7(%arg0: i32) -> (i32, i32) {
    %c0_i32 = arith.constant 0 : i32
    %c0_i32_0 = arith.constant 0 : i32
    %c0_i32_1 = arith.constant 0 : i32
    return %c0_i32, %c0_i32_0 : i32, i32
  }
  func.func @transform_8(%arg0: i32) -> (i32, i32) {
    %c0_i32 = arith.constant 0 : i32
    %c0_i32_0 = arith.constant 0 : i32
    %c0_i32_1 = arith.constant 0 : i32
    return %c0_i32, %c0_i32_0 : i32, i32
  }
  func.func @transform_9(%arg0: i32) -> (i32, i32) {
    %c0_i32 = arith.constant 0 : i32
    %c0_i32_0 = arith.constant 0 : i32
    return %arg0, %c0_i32 : i32, i32
  }
}

</mosaic_0001>

<bundles_post_ra>
// kernel: _ffn_jit.1
= control target key start
LH: loop header
LB: loop body
LE: loop exit
PB: predicated region body
PF: predicated region fallthrough
CT: control target
= control target key end

     0   :  { %14 = vsyncpa [#allocation3], 0  ;;  %s1581_s0 = inlined_call_operand.vmem [shape: f32[32,128], index: 0, kind: input, shape index: {}]   ;;  %s1582_s1 = inlined_call_operand.hbm [shape: f32[128,256], index: 1, kind: input, shape index: {}]   ;;  %s1583_s2 = inlined_call_operand.vmem [shape: f32[1,256], index: 2, kind: input, shape index: {}]   ;;  %s1584_s3 = inlined_call_operand.vmem [shape: f32[1,256], index: 3, kind: input, shape index: {}]   ;;  %s1585_s4 = inlined_call_operand.vmem [shape: f32[1,256], index: 4, kind: input, shape index: {}]   ;;  %s1586_s5 = inlined_call_operand.hbm [shape: f32[256,128], index: 5, kind: input, shape index: {}]   ;;  %s1587_s6 = inlined_call_operand.vmem [shape: f32[1,128], index: 6, kind: input, shape index: {}]   ;;  %s1588_s7 = inlined_call_operand.vmem [shape: f32[1,128], index: 7, kind: input, shape index: {}]   ;;  %s1589_s8 = inlined_call_operand.vmem [shape: f32[1,128], index: 8, kind: input, shape index: {}]   ;;  %s1590_s9 = inlined_call_operand.vmem [shape: f32[32,128], index: 9, kind: output, shape index: {}]  }
   0x1   :  { %15 = vsyncpa [#allocation5], 0  ;;  %s1348_s30 = smov 0  }
   0x2 LB: > { %s1291_s10 = smov [#allocation2]   ;;  %s951_s12 = sadd.s32 4294967295, %s1289_s30   ;;  %s1289_s30 = sphi %s1348_s30, %s21_s30  }
   0x3   : > { %s258_s11 = sshll.u32 %s1291_s10, 4  ;;  %p953_p0 = scmp.ge.s32.totalorder %s1289_s30, 1  ;;  %s259_s11 = int_to_ptr.vmem [resolvable:$true] %s258_s11 }
   0x4   : > { %p246_p1 = scmp.lt.s32.totalorder %s1289_s30, 3  ;;  %p1362_p3 = scmp.eq.s32.totalorder %s951_s12, 0 }
   0x5   : > { %s1292_s15 = smov [#allocation4]   ;;  %s1219_s20 = scalar_lea.hbm %s1582_s1, 4096 }
   0x6   : > { %p1356_p2 = pnand %p953_p0, %p246_p1  ;;  %s280_s16 = sshll.u32 %s1292_s15, 4  ;;  %s1374_s16 = int_to_ptr.vmem [resolvable:$true] %s280_s16 }
   0x7   : > { %s1595_s14 = scalar_select %p1362_p3, 1, 0 }
   0x8   : > { %s1594_s13 = scalar_select %p1356_p2, 1, 0 }
   0x9   : > { %p1177_p4 = pneg %p1356_p2  ;;  %p1220_p6 = scmp.ne.s32.totalorder %s1582_s1, %s1219_s20 }
   0xa   : > { %p1226_p10 = scmp.lt.u32.totalorder %s1219_s20, %s1582_s1 }
   0xb   : > { %p1370_p5 = pnand %p1362_p3, %p1177_p4 }
   0xd   : > { %p1221_p7 = pneg %p1370_p5 }
   0xf   : > { %p1222_p8 = pnand %p1221_p7, %p1220_p6 }
  0x11   : > { %p1223_p9 = pneg %p1222_p8 }
  0x13   : > { %p1228_p11 = pnand %p1226_p10, %p1223_p9 }
  0x15   : > { %1231 = shalt.err (!%p1228_p11)
}
  0x16   : > { %s1232_s25 = scalar_lea.vmem %s259_s11, 4096  ;;  %p1240_p1 = scmp.lt.s32.totalorder %s259_s11, %s259_s11 }
  0x17   : > { %p1233_p12 = scmp.ne.s32.totalorder %s259_s11, %s1232_s25  ;;  %p1241_p4 = scmp.lt.s32.totalorder %s1232_s25, %s1232_s25 }
  0x19   : > { %p1235_p13 = pnand %p1233_p12, %p1221_p7  ;;  %p1242_p3 = por %p1241_p4, %p1240_p1 }
  0x1b   : > { %p1236_p0 = pneg %p1235_p13 }
  0x1d   : > { %p1243_p2 = pnand %p1242_p3, %p1236_p0 }
  0x1f   : > { %1246 = shalt.err (!%p1243_p2)
}
  0x20   : > { %s1293_s26 = smov 256   ;;  %s1294_s27 = smov 16  }
  0x21   : > { %1180 = dma.hbm_to_vmem [thread:$0]  (!%p1370_p5), %s1582_s1, 4096, %s259_s11, [#allocation3], %s1293_s26, %s1293_s26, %s1294_s27  }
  0x22   : > { %s1247_s18 = scalar_lea.hbm %s1586_s5, 4096 }
  0x23   : > { %p1248_p6 = scmp.ne.s32.totalorder %s1586_s5, %s1247_s18  ;;  %p1254_p8 = scmp.lt.u32.totalorder %s1247_s18, %s1586_s5 }
  0x25   : > { %p1250_p2 = pnand %p1248_p6, %p1221_p7 }
  0x27   : > { %p1251_p3 = pneg %p1250_p2 }
  0x29   : > { %p1256_p9 = pnand %p1254_p8, %p1251_p3 }
  0x2b   : > { %1259 = shalt.err (!%p1256_p9)
}
  0x2c   : > { %s1260_s11 = scalar_lea.vmem %s1374_s16, 4096  ;;  %p1268_p13 = scmp.lt.s32.totalorder %s1374_s16, %s1374_s16 }
  0x2d   : > { %p1261_p10 = scmp.ne.s32.totalorder %s1374_s16, %s1260_s11  ;;  %p1269_p0 = scmp.lt.s32.totalorder %s1260_s11, %s1260_s11 }
  0x2f   : > { %p1263_p11 = pnand %p1261_p10, %p1221_p7  ;;  %p1270_p1 = por %p1269_p0, %p1268_p13 }
  0x31   : > { %p1264_p12 = pneg %p1263_p11 }
  0x33   : > { %p1271_p4 = pnand %p1270_p1, %p1264_p12 }
  0x35   : > { %1274 = shalt.err (!%p1271_p4)
}
  0x36   : > { %s1295_s23 = smov 128   ;;  %s1296_s24 = smov 8  }
  0x37   : > { %1183 = dma.hbm_to_vmem [thread:$0]  (!%p1370_p5), %s1586_s5, 4096, %s1374_s16, [#allocation5], %s1295_s23, %s1295_s23, %s1296_s24  }
  0x38   : > { %p1597_p6 = scmp.ne.s32.totalorder %s1594_s13, 0 }
  0x39   : > { %p1598_p7 = scmp.ne.s32.totalorder (!%p1597_p6), %s1595_s14, 0 }
  0x3a   : > { %314 = sbr.rel (%p1597_p6) target bundleno = 930 (0x3a2), region = 56 }
  0x41   : > { %1280 = dma.done.wait (%p1598_p7), [#allocation3], 4096  }
  0x42   : > { %1282 = vsyncadd (%p1598_p7), [#allocation3], 4294963200 }
  0x43   : > { %1284 = dma.done.wait (%p1598_p7), [#allocation5], 4096  }
  0x44   : > { %1286 = vsyncadd (%p1598_p7), [#allocation5], 4294963200  ;;  %v1297_v0 = vmov 0.0   ;;  %v373_v1 = vld [vmem:[#allocation2 + $0x8] sm:$0xff]  ;;  %v375_v2 = vld [vmem:[#allocation2 + $0x18] sm:$0xff]  ;;  %s960_s13 = sshll.u32 %s951_s12, 1  ;;  %v438_v51 = vlaneseq }
  0x45   : > { %512 = vmatprep.mubr.f32.mxu0 %v1297_v0  ;;  %v372_v3 = vld [vmem:[#allocation2] sm:$0xff]  ;;  %v1434_v4 = vpack.c.bf16 %v375_v2, %v373_v1  ;;  %v374_v5 = vld [vmem:[#allocation2 + $0x10] sm:$0xff]  ;;  %v377_v6 = vld [vmem:[#allocation2 + $0x28] sm:$0xff]  ;;  %p355_p5 = scmp.lt.s32.totalorder %s960_s13, 3 }
  0x46   : > { %v379_v7 = vld [vmem:[#allocation2 + $0x38] sm:$0xff]  ;;  %v1436_v8 = vpack.c.bf16 %v374_v5, %v372_v3  ;;  %v376_v10 = vld [vmem:[#allocation2 + $0x20] sm:$0xff]  ;;  %v378_v11 = vld [vmem:[#allocation2 + $0x30] sm:$0xff]  ;;  %v439_v52 = vshrl.u32 %v438_v51, 7 }
  0x47   : > { %v1438_v9 = vpack.c.bf16 %v379_v7, %v377_v6  ;;  %v381_v12 = vld [vmem:[#allocation2 + $0x48] sm:$0xff]  ;;  %1042 = vmatprep.subr.bf16.mxu0 %v1434_v4  ;;  %v383_v13 = vld [vmem:[#allocation2 + $0x58] sm:$0xff]  ;;  %v1047_v14 = vpack.c.bf16 %v378_v11, %v376_v10  ;;  %v380_v16 = vld [vmem:[#allocation2 + $0x40] sm:$0xff]  ;;  %s1600_s13 = smov (!%p355_p5, %s960_s13), 3 }
  0x48   : > { %1044 = vmatpush1.bf16.msra.mxu0 %v1436_v8  ;;  %v1049_v15 = vpack.c.bf16 %v383_v13, %v381_v12  ;;  %v382_v17 = vld [vmem:[#allocation2 + $0x50] sm:$0xff]  ;;  %v385_v18 = vld [vmem:[#allocation2 + $0x68] sm:$0xff]  ;;  %v387_v19 = vld [vmem:[#allocation2 + $0x78] sm:$0xff]  ;;  %s961_s12 = sshll.u32 %s1600_s13, 3  ;;  %v1457_v53 = vsub.s32 0, %v439_v52  ;;  %v1462_v55 = vsub.s32 1, %v439_v52 }
  0x49   : > { %1046 = vmatprep.subr.bf16.mxu0 %v1438_v9  ;;  %v1051_v20 = vpack.c.bf16 %v382_v17, %v380_v16  ;;  %v1053_v21 = vpack.c.bf16 %v387_v19, %v385_v18  ;;  %v384_v22 = vld [vmem:[#allocation2 + $0x60] sm:$0xff]  ;;  %v386_v23 = vld [vmem:[#allocation2 + $0x70] sm:$0xff]  ;;  %v389_v24 = vld [vmem:[#allocation2 + $0x88] sm:$0xff]  ;;  %s358_s17 = scalar_lea.vmem %s1581_s0, %s961_s12  ;;  %s364_s26 = scalar_lea.vmem %s1590_s9, %s961_s12 }
  0x4a   : > { %v391_v25 = vld [vmem:[#allocation2 + $0x98] sm:$0xff]  ;;  %v1055_v26 = vpack.c.bf16 %v386_v23, %v384_v22  ;;  %v388_v28 = vld [vmem:[#allocation2 + $0x80] sm:$0xff]  ;;  %v390_v29 = vld [vmem:[#allocation2 + $0x90] sm:$0xff] }
  0x4b   : > { %v1057_v27 = vpack.c.bf16 %v391_v25, %v389_v24  ;;  %v393_v30 = vld [vmem:[#allocation2 + $0xa8] sm:$0xff]  ;;  %v395_v31 = vld [vmem:[#allocation2 + $0xb8] sm:$0xff]  ;;  %v1059_v32 = vpack.c.bf16 %v390_v29, %v388_v28  ;;  %v392_v34 = vld [vmem:[#allocation2 + $0xa0] sm:$0xff] }
  0x4c   : > { %1048 = vmatpush1.bf16.msra.mxu0 %v1047_v14  ;;  %v1061_v33 = vpack.c.bf16 %v395_v31, %v393_v30  ;;  %v394_v35 = vld [vmem:[#allocation2 + $0xb0] sm:$0xff]  ;;  %v397_v36 = vld [vmem:[#allocation2 + $0xc8] sm:$0xff]  ;;  %v399_v37 = vld [vmem:[#allocation2 + $0xd8] sm:$0xff] }
  0x4d   : > { %1050 = vmatprep.subr.bf16.mxu0 %v1049_v15  ;;  %v1063_v38 = vpack.c.bf16 %v394_v35, %v392_v34  ;;  %v1065_v39 = vpack.c.bf16 %v399_v37, %v397_v36  ;;  %v396_v40 = vld [vmem:[#allocation2 + $0xc0] sm:$0xff]  ;;  %v398_v41 = vld [vmem:[#allocation2 + $0xd0] sm:$0xff]  ;;  %v401_v42 = vld [vmem:[#allocation2 + $0xe8] sm:$0xff] }
  0x4e   : > { %v403_v43 = vld [vmem:[#allocation2 + $0xf8] sm:$0xff]  ;;  %v1067_v44 = vpack.c.bf16 %v398_v41, %v396_v40  ;;  %v400_v46 = vld [vmem:[#allocation2 + $0xe0] sm:$0xff]  ;;  %v402_v47 = vld [vmem:[#allocation2 + $0xf0] sm:$0xff] }
  0x4f   : > { %v1069_v45 = vpack.c.bf16 %v403_v43, %v401_v42  ;;  %v1071_v48 = vpack.c.bf16 %v402_v47, %v400_v46  ;;  %v436_v49 = vld [vmem:[%s358_s17] sm:$0xff]  ;;  %v967_v50 = vld [vmem:[%s358_s17 + $0x8] sm:$0xff]  ;;  %v422_v10 = vld [vmem:[#allocation4 + $0x90] sm:$0xff] }
  0x50   : > { %1052 = vmatpush1.bf16.msra.mxu0 %v1051_v20  ;;  %v366_v54 = vld [vmem:[%s1583_s2] sm:$0x3]  ;;  %v423_v11 = vld [vmem:[#allocation4 + $0x98] sm:$0xff]  ;;  %v425_v18 = vld [vmem:[#allocation4 + $0xa8] sm:$0xff] }
  0x51   : > { %1054 = vmatprep.subr.bf16.mxu0 %v1053_v21  ;;  %v441_v56 = vrot.slane %v366_v54, %v1457_v53  ;;  %v445_v57 = vrot.slane %v366_v54, %v1462_v55  ;;  %v420_v3 = vld [vmem:[#allocation4 + $0x80] sm:$0xff]  ;;  %v407_v16 = vld [vmem:[#allocation4 + $0x18] sm:$0xff]  ;;  %v409_v25 = vld [vmem:[#allocation4 + $0x28] sm:$0xff] }
  0x52   : > { %v404_v5 = vld [vmem:[#allocation4] sm:$0xff]  ;;  %v410_v31 = vld [vmem:[#allocation4 + $0x30] sm:$0xff]  ;;  %v429_v34 = vld [vmem:[#allocation4 + $0xc8] sm:$0xff] }
  0x53   : > { %v424_v17 = vld [vmem:[#allocation4 + $0xa0] sm:$0xff]  ;;  %v430_v40 = vld [vmem:[#allocation4 + $0xd0] sm:$0xff]  ;;  %v431_v41 = vld [vmem:[#allocation4 + $0xd8] sm:$0xff] }
  0x54   : > { %1056 = vmatpush1.bf16.msra.mxu0 %v1055_v26  ;;  %v1497_v23 = vpack.c.bf16 %v425_v18, %v424_v17  ;;  %v408_v24 = vld [vmem:[#allocation4 + $0x20] sm:$0xff]  ;;  %v1516_v42 = vpack.c.bf16 %v431_v41, %v430_v40  ;;  %v414_v43 = vld [vmem:[#allocation4 + $0x50] sm:$0xff]  ;;  %v433_v47 = vld [vmem:[#allocation4 + $0xe8] sm:$0xff] }
  0x55   : > { %1058 = vmatprep.subr.bf16.mxu0 %v1057_v27  ;;  %v1500_v29 = vpack.c.bf16 %v409_v25, %v408_v24  ;;  %v412_v37 = vld [vmem:[#allocation4 + $0x40] sm:$0xff]  ;;  %v434_v52 = vld [vmem:[#allocation4 + $0xf0] sm:$0xff]  ;;  %v435_v54 = vld [vmem:[#allocation4 + $0xf8] sm:$0xff] }
  0x56   : > { %v432_v46 = vld [vmem:[#allocation4 + $0xe0] sm:$0xff] }
  0x58   : > { %1060 = vmatpush1.bf16.msra.mxu0 %v1059_v32 }
  0x59   : > { %1062 = vmatprep.subr.bf16.mxu0 %v1061_v33 }
  0x5c   : > { %1064 = vmatpush1.bf16.msra.mxu0 %v1063_v38 }
  0x5d   : > { %1066 = vmatprep.subr.bf16.mxu0 %v1065_v39 }
  0x60   : > { %1068 = vmatpush1.bf16.msra.mxu0 %v1067_v44 }
  0x61   : > { %1070 = vmatprep.subr.bf16.mxu0 %v1069_v45 }
  0x64   : > { %1072 = vmatpush1.bf16.msra.mxu0 %v1071_v48 }
  0x65   : > { %1106 = vmatprep.subr.bf16.mxu0 %v1434_v4  ;;  %v421_v4 = vld [vmem:[#allocation4 + $0x88] sm:$0xff] }
  0x67   : > { %513 = vmatmul.mubr.f32.vlgmr.msra.gmra.mrb[0].mxu0 %v436_v49  ;;  %v416_v49 = vld [vmem:[#allocation4 + $0x60] sm:$0xff] }
  0x68   : > { %1108 = vmatpush1.bf16.msra.mxu0 %v1436_v8  ;;  %745 = vmatprep.mubr.f32.mxu0 %v1297_v0  ;;  %v1478_v8 = vpack.c.bf16 %v421_v4, %v420_v3 }
  0x69   : > { %1110 = vmatprep.subr.bf16.mxu0 %v1438_v9  ;;  %v405_v9 = vld [vmem:[#allocation4 + $0x8] sm:$0xff] }
  0x6a   : > { %v1482_v13 = vpack.c.bf16 %v405_v9, %v404_v5  ;;  %1074 = vmatprep.subr.bf16.mxu1 %v1478_v8  ;;  %v368_v9 = vld [vmem:[%s1585_s4] sm:$0x3] }
  0x6b   : > { %v555_v18 = vrot.slane %v368_v9, %v1457_v53 }
  0x6c   : > { %1112 = vmatpush1.bf16.msra.mxu0 %v1047_v14  ;;  %v1484_v14 = vpack.c.bf16 %v423_v11, %v422_v10  ;;  %1076 = vmatpush3.bf16.msra.mxu1 %v1482_v13 }
  0x6d   : > { %1114 = vmatprep.subr.bf16.mxu0 %v1049_v15  ;;  %v406_v15 = vld [vmem:[#allocation4 + $0x10] sm:$0xff] }
  0x6e   : > { %v1494_v22 = vpack.c.bf16 %v407_v16, %v406_v15  ;;  %1078 = vmatprep.subr.bf16.mxu1 %v1484_v14 }
  0x70   : > { %1116 = vmatpush1.bf16.msra.mxu0 %v1051_v20  ;;  %1080 = vmatpush3.bf16.msra.mxu1 %v1494_v22 }
  0x71   : > { %1118 = vmatprep.subr.bf16.mxu0 %v1053_v21  ;;  %1082 = vmatprep.subr.bf16.mxu1 %v1497_v23 }
  0x74   : > { %1120 = vmatpush1.bf16.msra.mxu0 %v1055_v26  ;;  %v426_v26 = vld [vmem:[#allocation4 + $0xb0] sm:$0xff]  ;;  %1084 = vmatpush3.bf16.msra.mxu1 %v1500_v29 }
  0x75   : > { %1122 = vmatprep.subr.bf16.mxu0 %v1057_v27  ;;  %v427_v27 = vld [vmem:[#allocation4 + $0xb8] sm:$0xff] }
  0x76   : > { %v1503_v30 = vpack.c.bf16 %v427_v27, %v426_v26 }
  0x78   : > { %1124 = vmatpush1.bf16.msra.mxu0 %v1059_v32  ;;  %v411_v32 = vld [vmem:[#allocation4 + $0x38] sm:$0xff]  ;;  %1086 = vmatprep.subr.bf16.mxu1 %v1503_v30 }
  0x79   : > { %1126 = vmatprep.subr.bf16.mxu0 %v1061_v33  ;;  %v428_v33 = vld [vmem:[#allocation4 + $0xc0] sm:$0xff]  ;;  %v1506_v35 = vpack.c.bf16 %v411_v32, %v410_v31 }
  0x7a   : > { %v1509_v36 = vpack.c.bf16 %v429_v34, %v428_v33 }
  0x7b   : > { %1088 = vmatpush3.bf16.msra.mxu1 %v1506_v35 }
  0x7c   : > { %1128 = vmatpush1.bf16.msra.mxu0 %v1063_v38  ;;  %1090 = vmatprep.subr.bf16.mxu1 %v1509_v36  ;;  %v413_v38 = vld [vmem:[#allocation4 + $0x48] sm:$0xff] }
  0x7d   : > { %1130 = vmatprep.subr.bf16.mxu0 %v1065_v39  ;;  %v1513_v39 = vpack.c.bf16 %v413_v38, %v412_v37 }
  0x7f   : > { %1092 = vmatpush3.bf16.msra.mxu1 %v1513_v39 }
  0x80   : > { %1132 = vmatpush1.bf16.msra.mxu0 %v1067_v44  ;;  %v415_v44 = vld [vmem:[#allocation4 + $0x58] sm:$0xff]  ;;  %1094 = vmatprep.subr.bf16.mxu1 %v1516_v42 }
  0x81   : > { %1134 = vmatprep.subr.bf16.mxu0 %v1069_v45  ;;  %v1518_v45 = vpack.c.bf16 %v415_v44, %v414_v43 }
  0x83   : > { %1096 = vmatpush3.bf16.msra.mxu1 %v1518_v45 }
  0x84   : > { %1136 = vmatpush1.bf16.msra.mxu0 %v1071_v48  ;;  %v1522_v48 = vpack.c.bf16 %v433_v47, %v432_v46 }
  0x86   : > { %1098 = vmatprep.subr.bf16.mxu1 %v1522_v48 }
  0x87   : > { %746 = vmatmul.mubr.f32.vlgmr.msra.gmra.mrb[2].mxu0 %v967_v50  ;;  %v417_v50 = vld [vmem:[#allocation4 + $0x68] sm:$0xff] }
  0x88   : > { %v1524_v51 = vpack.c.bf16 %v417_v50, %v416_v49 }
  0x8a   : > { %1100 = vmatpush3.bf16.msra.mxu1 %v1524_v51 }
 0x13a   : > { %v514_v58 = vpop.f32.mrb[0].mxu0 }
 0x13b   : > { %v1466_v59 = vadd.f32 %v514_v58, %v441_v56  ;;  %v516_v60 = vpop.f32.mrb[1].mxu0  ;;  %v419_v58 = vld [vmem:[#allocation4 + $0x78] sm:$0xff] }
 0x13c   : > { %v1468_v61 = vadd.f32 %v516_v60, %v445_v57 }
 0x13d   : > { %v523_v63 = vmul.f32 %v1466_v59, %v1466_v59 }
 0x13e   : > { %v519_v62 = vadd.f32 %v1468_v61, %v1466_v59  ;;  %v524_v0 = vmul.f32 %v1468_v61, %v1468_v61 }
 0x140   : > { %520 = vadd.xlane.f32.xlu0 %v519_v62  ;;  %v525_v1 = vadd.f32 %v524_v0, %v523_v63 }
 0x144   : > { %526 = vadd.xlane.f32.xlu0 %v525_v1 }
 0x15a   : > { %v747_v2 = vpop.f32.mrb[2].mxu0 }
 0x15b   : > { %v1476_v6 = vadd.f32 %v747_v2, %v441_v56  ;;  %v749_v7 = vpop.f32.mrb[3].mxu0  ;;  %v1528_v56 = vpack.c.bf16 %v435_v54, %v434_v52 }
 0x15c   : > { %v1480_v12 = vadd.f32 %v749_v7, %v445_v57  ;;  %v418_v57 = vld [vmem:[#allocation4 + $0x70] sm:$0xff]  ;;  %v367_v7 = vld [vmem:[%s1584_s3] sm:$0x3] }
 0x15d   : > { %v756_v20 = vmul.f32 %v1476_v6, %v1476_v6  ;;  %v1530_v60 = vpack.c.bf16 %v419_v58, %v418_v57  ;;  %1102 = vmatprep.subr.bf16.mxu1 %v1528_v56  ;;  %v542_v11 = vrot.slane %v367_v7, %v1457_v53  ;;  %v546_v15 = vrot.slane %v367_v7, %v1462_v55 }
 0x15e   : > { %v752_v19 = vadd.f32 %v1480_v12, %v1476_v6  ;;  %v757_v21 = vmul.f32 %v1480_v12, %v1480_v12 }
 0x15f   : > { %1104 = vmatpush3.bf16.msra.mxu1 %v1530_v60 }
 0x160   : > { %753 = vadd.xlane.f32.xlu1 %v752_v19  ;;  %v758_v28 = vadd.f32 %v757_v21, %v756_v20  ;;  %1138 = vmatprep.subr.bf16.mxu1 %v1478_v8  ;;  %v559_v19 = vrot.slane %v368_v9, %v1462_v55 }
 0x164   : > { %759 = vadd.xlane.f32.xlu1 %v758_v28 }
 0x1cd   : > { %v521_v62 = vpop.xlane.xlu0 %520 }
 0x1ce   : > { %v522_v63 = vmul.f32 0.00390625, %v521_v62 }
 0x1d0   : > { %v529_v1 = vmul.f32 %v522_v63, %v522_v63  ;;  %v532_v10 = vsub.f32 %v1466_v59, %v522_v63  ;;  %v533_v8 = vsub.f32 %v1468_v61, %v522_v63 }
 0x1d1   : > { %v527_v0 = vpop.xlane.xlu0 %526 }
 0x1d2   : > { %v528_v2 = vmul.f32 0.00390625, %v527_v0 }
 0x1d4   : > { %v530_v3 = vsub.f32 %v528_v2, %v529_v1 }
 0x1d6   : > { %v531_v4 = vmax.f32 %v530_v3, 0.0 }
 0x1d8   : > { %v534_v5 = vadd.f32 1e-05, %v531_v4 }
 0x1da   : > { %1203 = vrsqrt.f32 %v534_v5 }
 0x1e4   : > { %v1204_v16 = vpop.eup %1203 }
 0x1e5   : > { %v537_v17 = vmul.f32 %v1204_v16, %v533_v8  ;;  %v536_v20 = vmul.f32 %v1204_v16, %v532_v10 }
 0x1e7   : > { %v550_v21 = vmul.f32 %v546_v15, %v537_v17  ;;  %v549_v24 = vmul.f32 %v542_v11, %v536_v20 }
 0x1e9   : > { %v563_v25 = vadd.f32 %v559_v19, %v550_v21  ;;  %v562_v26 = vadd.f32 %v555_v18, %v549_v24  ;;  %v966_v21 = vld [vmem:[%s1589_s8] ss:$0 sm:$0xff] }
 0x1eb   : > { %v567_v27 = vmul.f32 0.70710677, %v563_v25  ;;  %v566_v28 = vmul.f32 0.70710677, %v562_v26  ;;  %v565_v55 = vmul.f32 0.5, %v563_v25  ;;  %v564_v43 = vmul.f32 0.5, %v562_v26 }
 0x1ed   : > { %v754_v59 = vpop.xlane.xlu1 %753  ;;  %1205 = verf.f32 %v567_v27 }
 0x1ee   : > { %v755_v61 = vmul.f32 0.00390625, %v754_v59  ;;  %1207 = verf.f32 %v566_v28 }
 0x1f0   : > { %v762_v32 = vmul.f32 %v755_v61, %v755_v61  ;;  %v765_v49 = vsub.f32 %v1476_v6, %v755_v61  ;;  %v766_v50 = vsub.f32 %v1480_v12, %v755_v61 }
 0x1f1   : > { %v760_v31 = vpop.xlane.xlu1 %759 }
 0x1f2   : > { %v761_v33 = vmul.f32 0.00390625, %v760_v31 }
 0x1f4   : > { %v763_v34 = vsub.f32 %v761_v33, %v762_v32 }
 0x1f6   : > { %v764_v37 = vmax.f32 %v763_v34, 0.0 }
 0x1f7   : > { %v1206_v38 = vpop.eup %1205 }
 0x1f8   : > { %v1208_v53 = vpop.eup %1207  ;;  %v767_v40 = vadd.f32 1e-05, %v764_v37  ;;  %v571_v41 = vadd.f32 1.0, %v1206_v38 }
 0x1f9   : > { %v570_v44 = vadd.f32 1.0, %v1208_v53 }
 0x1fa   : > { %1209 = vrsqrt.f32 %v767_v40  ;;  %v573_v46 = vmul.f32 %v571_v41, %v565_v55 }
 0x1fb   : > { %v572_v47 = vmul.f32 %v570_v44, %v564_v43 }
 0x1fc   : > { %644 = vmatprep.mubr.f32.mxu1 %v573_v46 }
 0x1fd   : > { %645 = vmatmul.mubr.f32.vlgmr.msra.gmra.mrb[0].mxu1 %v572_v47 }
 0x1fe   : > { %1140 = vmatpush3.bf16.msra.mxu1 %v1482_v13 }
 0x1ff   : > { %1142 = vmatprep.subr.bf16.mxu1 %v1484_v14 }
 0x202   : > { %1144 = vmatpush3.bf16.msra.mxu1 %v1494_v22 }
 0x203   : > { %1146 = vmatprep.subr.bf16.mxu1 %v1497_v23 }
 0x204   : > { %v1210_v52 = vpop.eup %1209 }
 0x205   : > { %v769_v54 = vmul.f32 %v1210_v52, %v765_v49  ;;  %v770_v57 = vmul.f32 %v1210_v52, %v766_v50 }
 0x206   : > { %1148 = vmatpush3.bf16.msra.mxu1 %v1500_v29 }
 0x207   : > { %v771_v58 = vmul.f32 %v769_v54, %v542_v11  ;;  %1150 = vmatprep.subr.bf16.mxu1 %v1503_v30  ;;  %v772_v62 = vmul.f32 %v770_v57, %v546_v15 }
 0x209   : > { %v773_v13 = vadd.f32 %v771_v58, %v555_v18  ;;  %v774_v63 = vadd.f32 %v772_v62, %v559_v19  ;;  %v965_v19 = vld [vmem:[%s1588_s7] ss:$0 sm:$0xff] }
 0x20a   : > { %1152 = vmatpush3.bf16.msra.mxu1 %v1506_v35 }
 0x20b   : > { %v777_v14 = vmul.f32 0.70710677, %v773_v13  ;;  %1154 = vmatprep.subr.bf16.mxu1 %v1509_v36  ;;  %v778_v6 = vmul.f32 0.70710677, %v774_v63  ;;  %v776_v23 = vmul.f32 0.5, %v774_v63  ;;  %v775_v30 = vmul.f32 0.5, %v773_v13 }
 0x20d   : > { %1211 = verf.f32 %v778_v6 }
 0x20e   : > { %1156 = vmatpush3.bf16.msra.mxu1 %v1513_v39  ;;  %1213 = verf.f32 %v777_v14 }
 0x20f   : > { %1158 = vmatprep.subr.bf16.mxu1 %v1516_v42 }
 0x212   : > { %1160 = vmatpush3.bf16.msra.mxu1 %v1518_v45  ;;  %v964_v45 = vld [vmem:[%s1587_s6] ss:$0 sm:$0xff] }
 0x213   : > { %1162 = vmatprep.subr.bf16.mxu1 %v1522_v48 }
 0x216   : > { %1164 = vmatpush3.bf16.msra.mxu1 %v1524_v51 }
 0x217   : > { %v1212_v12 = vpop.eup %1211  ;;  %1166 = vmatprep.subr.bf16.mxu1 %v1528_v56 }
 0x218   : > { %v1214_v22 = vpop.eup %1213  ;;  %v782_v29 = vadd.f32 1.0, %v1212_v12 }
 0x219   : > { %v781_v35 = vadd.f32 1.0, %v1214_v22 }
 0x21a   : > { %1168 = vmatpush3.bf16.msra.mxu1 %v1530_v60  ;;  %v784_v36 = vmul.f32 %v782_v29, %v776_v23 }
 0x21b   : > { %v783_v39 = vmul.f32 %v781_v35, %v775_v30 }
 0x21c   : > { %849 = vmatprep.mubr.f32.mxu1 %v784_v36 }
 0x21d   : > { %850 = vmatmul.mubr.f32.vlgmr.msra.gmra.mrb[2].mxu1 %v783_v39 }
 0x2d0   : > { %v1003_v42 = vpop.f32.mrb[0].mxu1 }
 0x2d1   : > { %v1004_v48 = vpop.f32.mrb[1].mxu1 }
 0x2d2   : > { %v1005_v51 = vadd.f32 %v1004_v48, %v1003_v42 }
 0x2d4   : > { %v647_v0 = vadd.f32 %v1005_v51, %v964_v45 }
 0x2d6   : > { %650 = vadd.xlane.f32.xlu0 %v647_v0  ;;  %v653_v56 = vmul.f32 %v647_v0, %v647_v0 }
 0x2da   : > { %654 = vadd.xlane.f32.xlu0 %v653_v56 }
 0x2f0   : > { %v1038_v1 = vpop.f32.mrb[2].mxu1 }
 0x2f1   : > { %v1039_v2 = vpop.f32.mrb[3].mxu1 }
 0x2f2   : > { %v1040_v3 = vadd.f32 %v1039_v2, %v1038_v1 }
 0x2f4   : > { %v852_v4 = vadd.f32 %v1040_v3, %v964_v45 }
 0x2f6   : > { %855 = vadd.xlane.f32.xlu1 %v852_v4  ;;  %v858_v60 = vmul.f32 %v852_v4, %v852_v4 }
 0x2fa   : > { %859 = vadd.xlane.f32.xlu1 %v858_v60 }
 0x363   : > { %v651_v5 = vpop.xlane.xlu0 %650 }
 0x364   : > { %v652_v7 = vmul.f32 0.0078125, %v651_v5 }
 0x366   : > { %v657_v10 = vmul.f32 %v652_v7, %v652_v7  ;;  %v660_v17 = vsub.f32 %v647_v0, %v652_v7 }
 0x367   : > { %v655_v9 = vpop.xlane.xlu0 %654 }
 0x368   : > { %v656_v8 = vmul.f32 0.0078125, %v655_v9 }
 0x36a   : > { %v658_v11 = vsub.f32 %v656_v8, %v657_v10 }
 0x36c   : > { %v659_v15 = vmax.f32 %v658_v11, 0.0 }
 0x36e   : > { %v661_v16 = vadd.f32 1e-05, %v659_v15 }
 0x370   : > { %1215 = vrsqrt.f32 %v661_v16 }
 0x37a   : > { %v1216_v18 = vpop.eup %1215 }
 0x37b   : > { %v663_v20 = vmul.f32 %v1216_v18, %v660_v17 }
 0x37d   : > { %v670_v24 = vmul.f32 %v965_v19, %v663_v20 }
 0x37f   : > { %v677_v25 = vadd.f32 %v966_v21, %v670_v24 }
 0x381   : > { %678 = vst [vmem:[%s364_s26] sm:$0xff] %v677_v25 }
 0x383   : > { %v856_v26 = vpop.xlane.xlu1 %855 }
 0x384   : > { %v857_v27 = vmul.f32 0.0078125, %v856_v26 }
 0x386   : > { %v862_v59 = vmul.f32 %v857_v27, %v857_v27  ;;  %v865_v34 = vsub.f32 %v852_v4, %v857_v27 }
 0x387   : > { %v860_v28 = vpop.xlane.xlu1 %859 }
 0x388   : > { %v861_v61 = vmul.f32 0.0078125, %v860_v28 }
 0x38a   : > { %v863_v31 = vsub.f32 %v861_v61, %v862_v59 }
 0x38c   : > { %v864_v32 = vmax.f32 %v863_v31, 0.0 }
 0x38e   : > { %v866_v33 = vadd.f32 1e-05, %v864_v32 }
 0x390   : > { %1217 = vrsqrt.f32 %v866_v33 }
 0x39a   : > { %v1218_v37 = vpop.eup %1217 }
 0x39b   : > { %v868_v38 = vmul.f32 %v1218_v37, %v865_v34 }
 0x39d   : > { %v869_v53 = vmul.f32 %v965_v19, %v868_v38 }
 0x39f   : > { %v870_v40 = vadd.f32 %v966_v21, %v869_v53 }
 0x3a1   : > { %968 = vst [vmem:[%s364_s26 + $0x8] sm:$0xff] %v870_v40 }
 0x3a2 PF: > { %s21_s30 = sadd.s32 1, %s1289_s30  }
 0x3a3   : > { %p18_p2 = scmp.ge.s32.totalorder %s21_s30, 4  }
 0x3a5   :  { %20 = sbr.rel (!%p18_p2) target bundleno = 2 (0x2), region = 97 }
 0x3ac   :  { %895 = vsyncpa [#allocation3], 1 }
 0x3ad   :  { %897 = vsyncpa [#allocation3 + $0x1], 1 }
 0x3ae   :  { %898 = vsyncpa [#allocation5], 1 }

// kernel: _ffn_jit.1
= control target key start
LH: loop header
LB: loop body
LE: loop exit
PB: predicated region body
PF: predicated region fallthrough
CT: control target
= control target key end

     0   :  { %14 = vsyncpa [#allocation3], 0  ;;  %s1581_s0 = inlined_call_operand.vmem [shape: f32[32,128], index: 0, kind: input, shape index: {}]   ;;  %s1582_s1 = inlined_call_operand.hbm [shape: f32[128,256], index: 1, kind: input, shape index: {}]   ;;  %s1583_s2 = inlined_call_operand.vmem [shape: f32[1,256], index: 2, kind: input, shape index: {}]   ;;  %s1584_s3 = inlined_call_operand.vmem [shape: f32[1,256], index: 3, kind: input, shape index: {}]   ;;  %s1585_s4 = inlined_call_operand.vmem [shape: f32[1,256], index: 4, kind: input, shape index: {}]   ;;  %s1586_s5 = inlined_call_operand.hbm [shape: f32[256,128], index: 5, kind: input, shape index: {}]   ;;  %s1587_s6 = inlined_call_operand.vmem [shape: f32[1,128], index: 6, kind: input, shape index: {}]   ;;  %s1588_s7 = inlined_call_operand.vmem [shape: f32[1,128], index: 7, kind: input, shape index: {}]   ;;  %s1589_s8 = inlined_call_operand.vmem [shape: f32[1,128], index: 8, kind: input, shape index: {}]   ;;  %s1590_s9 = inlined_call_operand.vmem [shape: f32[32,128], index: 9, kind: output, shape index: {}]  }
   0x1   :  { %15 = vsyncpa [#allocation5], 0  ;;  %s1348_s30 = smov 0  }
   0x2 LB: > { %s1291_s10 = smov [#allocation2]   ;;  %s951_s12 = sadd.s32 4294967295, %s1289_s30   ;;  %s1289_s30 = sphi %s1348_s30, %s21_s30  }
   0x3   : > { %s258_s11 = sshll.u32 %s1291_s10, 4  ;;  %p953_p0 = scmp.ge.s32.totalorder %s1289_s30, 1  ;;  %s259_s11 = int_to_ptr.vmem [resolvable:$true] %s258_s11 }
   0x4   : > { %p246_p1 = scmp.lt.s32.totalorder %s1289_s30, 3  ;;  %p1362_p3 = scmp.eq.s32.totalorder %s951_s12, 0 }
   0x5   : > { %s1292_s15 = smov [#allocation4]   ;;  %s1219_s20 = scalar_lea.hbm %s1582_s1, 4096 }
   0x6   : > { %p1356_p2 = pnand %p953_p0, %p246_p1  ;;  %s280_s16 = sshll.u32 %s1292_s15, 4  ;;  %s1374_s16 = int_to_ptr.vmem [resolvable:$true] %s280_s16 }
   0x7   : > { %s1595_s14 = scalar_select %p1362_p3, 1, 0 }
   0x8   : > { %s1594_s13 = scalar_select %p1356_p2, 1, 0 }
   0x9   : > { %p1177_p4 = pneg %p1356_p2  ;;  %p1220_p6 = scmp.ne.s32.totalorder %s1582_s1, %s1219_s20 }
   0xa   : > { %p1226_p10 = scmp.lt.u32.totalorder %s1219_s20, %s1582_s1 }
   0xb   : > { %p1370_p5 = pnand %p1362_p3, %p1177_p4 }
   0xd   : > { %p1221_p7 = pneg %p1370_p5 }
   0xf   : > { %p1222_p8 = pnand %p1221_p7, %p1220_p6 }
  0x11   : > { %p1223_p9 = pneg %p1222_p8 }
  0x13   : > { %p1228_p11 = pnand %p1226_p10, %p1223_p9 }
  0x15   : > { %1231 = shalt.err (!%p1228_p11)
}
  0x16   : > { %s1232_s25 = scalar_lea.vmem %s259_s11, 4096  ;;  %p1240_p1 = scmp.lt.s32.totalorder %s259_s11, %s259_s11 }
  0x17   : > { %p1233_p12 = scmp.ne.s32.totalorder %s259_s11, %s1232_s25  ;;  %p1241_p4 = scmp.lt.s32.totalorder %s1232_s25, %s1232_s25 }
  0x19   : > { %p1235_p13 = pnand %p1233_p12, %p1221_p7  ;;  %p1242_p3 = por %p1241_p4, %p1240_p1 }
  0x1b   : > { %p1236_p0 = pneg %p1235_p13 }
  0x1d   : > { %p1243_p2 = pnand %p1242_p3, %p1236_p0 }
  0x1f   : > { %1246 = shalt.err (!%p1243_p2)
}
  0x20   : > { %s1293_s26 = smov 256   ;;  %s1294_s27 = smov 16  }
  0x21   : > { %1180 = dma.hbm_to_vmem [thread:$0]  (!%p1370_p5), %s1582_s1, 4096, %s259_s11, [#allocation3], %s1293_s26, %s1293_s26, %s1294_s27  }
  0x22   : > { %s1247_s18 = scalar_lea.hbm %s1586_s5, 4096 }
  0x23   : > { %p1248_p6 = scmp.ne.s32.totalorder %s1586_s5, %s1247_s18  ;;  %p1254_p8 = scmp.lt.u32.totalorder %s1247_s18, %s1586_s5 }
  0x25   : > { %p1250_p2 = pnand %p1248_p6, %p1221_p7 }
  0x27   : > { %p1251_p3 = pneg %p1250_p2 }
  0x29   : > { %p1256_p9 = pnand %p1254_p8, %p1251_p3 }
  0x2b   : > { %1259 = shalt.err (!%p1256_p9)
}
  0x2c   : > { %s1260_s11 = scalar_lea.vmem %s1374_s16, 4096  ;;  %p1268_p13 = scmp.lt.s32.totalorder %s1374_s16, %s1374_s16 }
  0x2d   : > { %p1261_p10 = scmp.ne.s32.totalorder %s1374_s16, %s1260_s11  ;;  %p1269_p0 = scmp.lt.s32.totalorder %s1260_s11, %s1260_s11 }
  0x2f   : > { %p1263_p11 = pnand %p1261_p10, %p1221_p7  ;;  %p1270_p1 = por %p1269_p0, %p1268_p13 }
  0x31   : > { %p1264_p12 = pneg %p1263_p11 }
  0x33   : > { %p1271_p4 = pnand %p1270_p1, %p1264_p12 }
  0x35   : > { %1274 = shalt.err (!%p1271_p4)
}
  0x36   : > { %s1295_s23 = smov 128   ;;  %s1296_s24 = smov 8  }
  0x37   : > { %1183 = dma.hbm_to_vmem [thread:$0]  (!%p1370_p5), %s1586_s5, 4096, %s1374_s16, [#allocation5], %s1295_s23, %s1295_s23, %s1296_s24  }
  0x38   : > { %p1597_p6 = scmp.ne.s32.totalorder %s1594_s13, 0 }
  0x39   : > { %p1598_p7 = scmp.ne.s32.totalorder (!%p1597_p6), %s1595_s14, 0 }
  0x3a   : > { %314 = sbr.rel (%p1597_p6) target bundleno = 930 (0x3a2), region = 56 }
  0x41   : > { %1280 = dma.done.wait (%p1598_p7), [#allocation3], 4096  }
  0x42   : > { %1282 = vsyncadd (%p1598_p7), [#allocation3], 4294963200 }
  0x43   : > { %1284 = dma.done.wait (%p1598_p7), [#allocation5], 4096  }
  0x44   : > { %1286 = vsyncadd (%p1598_p7), [#allocation5], 4294963200  ;;  %v1297_v0 = vmov 0.0   ;;  %v373_v1 = vld [vmem:[#allocation2 + $0x8] sm:$0xff]  ;;  %v375_v2 = vld [vmem:[#allocation2 + $0x18] sm:$0xff]  ;;  %s960_s13 = sshll.u32 %s951_s12, 1  ;;  %v438_v51 = vlaneseq }
  0x45   : > { %512 = vmatprep.mubr.f32.mxu0 %v1297_v0  ;;  %v372_v3 = vld [vmem:[#allocation2] sm:$0xff]  ;;  %v1434_v4 = vpack.c.bf16 %v375_v2, %v373_v1  ;;  %v374_v5 = vld [vmem:[#allocation2 + $0x10] sm:$0xff]  ;;  %v377_v6 = vld [vmem:[#allocation2 + $0x28] sm:$0xff]  ;;  %p355_p5 = scmp.lt.s32.totalorder %s960_s13, 3 }
  0x46   : > { %v379_v7 = vld [vmem:[#allocation2 + $0x38] sm:$0xff]  ;;  %v1436_v8 = vpack.c.bf16 %v374_v5, %v372_v3  ;;  %v376_v10 = vld [vmem:[#allocation2 + $0x20] sm:$0xff]  ;;  %v378_v11 = vld [vmem:[#allocation2 + $0x30] sm:$0xff]  ;;  %v439_v52 = vshrl.u32 %v438_v51, 7 }
  0x47   : > { %v1438_v9 = vpack.c.bf16 %v379_v7, %v377_v6  ;;  %v381_v12 = vld [vmem:[#allocation2 + $0x48] sm:$0xff]  ;;  %1042 = vmatprep.subr.bf16.mxu0 %v1434_v4  ;;  %v383_v13 = vld [vmem:[#allocation2 + $0x58] sm:$0xff]  ;;  %v1047_v14 = vpack.c.bf16 %v378_v11, %v376_v10  ;;  %v380_v16 = vld [vmem:[#allocation2 + $0x40] sm:$0xff]  ;;  %s1600_s13 = smov (!%p355_p5, %s960_s13), 3 }
  0x48   : > { %1044 = vmatpush1.bf16.msra.mxu0 %v1436_v8  ;;  %v1049_v15 = vpack.c.bf16 %v383_v13, %v381_v12  ;;  %v382_v17 = vld [vmem:[#allocation2 + $0x50] sm:$0xff]  ;;  %v385_v18 = vld [vmem:[#allocation2 + $0x68] sm:$0xff]  ;;  %v387_v19 = vld [vmem:[#allocation2 + $0x78] sm:$0xff]  ;;  %s961_s12 = sshll.u32 %s1600_s13, 3  ;;  %v1457_v53 = vsub.s32 0, %v439_v52  ;;  %v1462_v55 = vsub.s32 1, %v439_v52 }
  0x49   : > { %1046 = vmatprep.subr.bf16.mxu0 %v1438_v9  ;;  %v1051_v20 = vpack.c.bf16 %v382_v17, %v380_v16  ;;  %v1053_v21 = vpack.c.bf16 %v387_v19, %v385_v18  ;;  %v384_v22 = vld [vmem:[#allocation2 + $0x60] sm:$0xff]  ;;  %v386_v23 = vld [vmem:[#allocation2 + $0x70] sm:$0xff]  ;;  %v389_v24 = vld [vmem:[#allocation2 + $0x88] sm:$0xff]  ;;  %s358_s17 = scalar_lea.vmem %s1581_s0, %s961_s12  ;;  %s364_s26 = scalar_lea.vmem %s1590_s9, %s961_s12 }
  0x4a   : > { %v391_v25 = vld [vmem:[#allocation2 + $0x98] sm:$0xff]  ;;  %v1055_v26 = vpack.c.bf16 %v386_v23, %v384_v22  ;;  %v388_v28 = vld [vmem:[#allocation2 + $0x80] sm:$0xff]  ;;  %v390_v29 = vld [vmem:[#allocation2 + $0x90] sm:$0xff] }
  0x4b   : > { %v1057_v27 = vpack.c.bf16 %v391_v25, %v389_v24  ;;  %v393_v30 = vld [vmem:[#allocation2 + $0xa8] sm:$0xff]  ;;  %v395_v31 = vld [vmem:[#allocation2 + $0xb8] sm:$0xff]  ;;  %v1059_v32 = vpack.c.bf16 %v390_v29, %v388_v28  ;;  %v392_v34 = vld [vmem:[#allocation2 + $0xa0] sm:$0xff] }
  0x4c   : > { %1048 = vmatpush1.bf16.msra.mxu0 %v1047_v14  ;;  %v1061_v33 = vpack.c.bf16 %v395_v31, %v393_v30  ;;  %v394_v35 = vld [vmem:[#allocation2 + $0xb0] sm:$0xff]  ;;  %v397_v36 = vld [vmem:[#allocation2 + $0xc8] sm:$0xff]  ;;  %v399_v37 = vld [vmem:[#allocation2 + $0xd8] sm:$0xff] }
  0x4d   : > { %1050 = vmatprep.subr.bf16.mxu0 %v1049_v15  ;;  %v1063_v38 = vpack.c.bf16 %v394_v35, %v392_v34  ;;  %v1065_v39 = vpack.c.bf16 %v399_v37, %v397_v36  ;;  %v396_v40 = vld [vmem:[#allocation2 + $0xc0] sm:$0xff]  ;;  %v398_v41 = vld [vmem:[#allocation2 + $0xd0] sm:$0xff]  ;;  %v401_v42 = vld [vmem:[#allocation2 + $0xe8] sm:$0xff] }
  0x4e   : > { %v403_v43 = vld [vmem:[#allocation2 + $0xf8] sm:$0xff]  ;;  %v1067_v44 = vpack.c.bf16 %v398_v41, %v396_v40  ;;  %v400_v46 = vld [vmem:[#allocation2 + $0xe0] sm:$0xff]  ;;  %v402_v47 = vld [vmem:[#allocation2 + $0xf0] sm:$0xff] }
  0x4f   : > { %v1069_v45 = vpack.c.bf16 %v403_v43, %v401_v42  ;;  %v1071_v48 = vpack.c.bf16 %v402_v47, %v400_v46  ;;  %v436_v49 = vld [vmem:[%s358_s17] sm:$0xff]  ;;  %v967_v50 = vld [vmem:[%s358_s17 + $0x8] sm:$0xff]  ;;  %v422_v10 = vld [vmem:[#allocation4 + $0x90] sm:$0xff] }
  0x50   : > { %1052 = vmatpush1.bf16.msra.mxu0 %v1051_v20  ;;  %v366_v54 = vld [vmem:[%s1583_s2] sm:$0x3]  ;;  %v423_v11 = vld [vmem:[#allocation4 + $0x98] sm:$0xff]  ;;  %v425_v18 = vld [vmem:[#allocation4 + $0xa8] sm:$0xff] }
  0x51   : > { %1054 = vmatprep.subr.bf16.mxu0 %v1053_v21  ;;  %v441_v56 = vrot.slane %v366_v54, %v1457_v53  ;;  %v445_v57 = vrot.slane %v366_v54, %v1462_v55  ;;  %v420_v3 = vld [vmem:[#allocation4 + $0x80] sm:$0xff]  ;;  %v407_v16 = vld [vmem:[#allocation4 + $0x18] sm:$0xff]  ;;  %v409_v25 = vld [vmem:[#allocation4 + $0x28] sm:$0xff] }
  0x52   : > { %v404_v5 = vld [vmem:[#allocation4] sm:$0xff]  ;;  %v410_v31 = vld [vmem:[#allocation4 + $0x30] sm:$0xff]  ;;  %v429_v34 = vld [vmem:[#allocation4 + $0xc8] sm:$0xff] }
  0x53   : > { %v424_v17 = vld [vmem:[#allocation4 + $0xa0] sm:$0xff]  ;;  %v430_v40 = vld [vmem:[#allocation4 + $0xd0] sm:$0xff]  ;;  %v431_v41 = vld [vmem:[#allocation4 + $0xd8] sm:$0xff] }
  0x54   : > { %1056 = vmatpush1.bf16.msra.mxu0 %v1055_v26  ;;  %v1497_v23 = vpack.c.bf16 %v425_v18, %v424_v17  ;;  %v408_v24 = vld [vmem:[#allocation4 + $0x20] sm:$0xff]  ;;  %v1516_v42 = vpack.c.bf16 %v431_v41, %v430_v40  ;;  %v414_v43 = vld [vmem:[#allocation4 + $0x50] sm:$0xff]  ;;  %v433_v47 = vld [vmem:[#allocation4 + $0xe8] sm:$0xff] }
  0x55   : > { %1058 = vmatprep.subr.bf16.mxu0 %v1057_v27  ;;  %v1500_v29 = vpack.c.bf16 %v409_v25, %v408_v24  ;;  %v412_v37 = vld [vmem:[#allocation4 + $0x40] sm:$0xff]  ;;  %v434_v52 = vld [vmem:[#allocation4 + $0xf0] sm:$0xff]  ;;  %v435_v54 = vld [vmem:[#allocation4 + $0xf8] sm:$0xff] }
  0x56   : > { %v432_v46 = vld [vmem:[#allocation4 + $0xe0] sm:$0xff] }
  0x58   : > { %1060 = vmatpush1.bf16.msra.mxu0 %v1059_v32 }
  0x59   : > { %1062 = vmatprep.subr.bf16.mxu0 %v1061_v33 }
  0x5c   : > { %1064 = vmatpush1.bf16.msra.mxu0 %v1063_v38 }
  0x5d   : > { %1066 = vmatprep.subr.bf16.mxu0 %v1065_v39 }
  0x60   : > { %1068 = vmatpush1.bf16.msra.mxu0 %v1067_v44 }
  0x61   : > { %1070 = vmatprep.subr.bf16.mxu0 %v1069_v45 }
  0x64   : > { %1072 = vmatpush1.bf16.msra.mxu0 %v1071_v48 }
  0x65   : > { %1106 = vmatprep.subr.bf16.mxu0 %v1434_v4  ;;  %v421_v4 = vld [vmem:[#allocation4 + $0x88] sm:$0xff] }
  0x67   : > { %513 = vmatmul.mubr.f32.vlgmr.msra.gmra.mrb[0].mxu0 %v436_v49  ;;  %v416_v49 = vld [vmem:[#allocation4 + $0x60] sm:$0xff] }
  0x68   : > { %1108 = vmatpush1.bf16.msra.mxu0 %v1436_v8  ;;  %745 = vmatprep.mubr.f32.mxu0 %v1297_v0  ;;  %v1478_v8 = vpack.c.bf16 %v421_v4, %v420_v3 }
  0x69   : > { %1110 = vmatprep.subr.bf16.mxu0 %v1438_v9  ;;  %v405_v9 = vld [vmem:[#allocation4 + $0x8] sm:$0xff] }
  0x6a   : > { %v1482_v13 = vpack.c.bf16 %v405_v9, %v404_v5  ;;  %1074 = vmatprep.subr.bf16.mxu1 %v1478_v8  ;;  %v368_v9 = vld [vmem:[%s1585_s4] sm:$0x3] }
  0x6b   : > { %v555_v18 = vrot.slane %v368_v9, %v1457_v53 }
  0x6c   : > { %1112 = vmatpush1.bf16.msra.mxu0 %v1047_v14  ;;  %v1484_v14 = vpack.c.bf16 %v423_v11, %v422_v10  ;;  %1076 = vmatpush3.bf16.msra.mxu1 %v1482_v13 }
  0x6d   : > { %1114 = vmatprep.subr.bf16.mxu0 %v1049_v15  ;;  %v406_v15 = vld [vmem:[#allocation4 + $0x10] sm:$0xff] }
  0x6e   : > { %v1494_v22 = vpack.c.bf16 %v407_v16, %v406_v15  ;;  %1078 = vmatprep.subr.bf16.mxu1 %v1484_v14 }
  0x70   : > { %1116 = vmatpush1.bf16.msra.mxu0 %v1051_v20  ;;  %1080 = vmatpush3.bf16.msra.mxu1 %v1494_v22 }
  0x71   : > { %1118 = vmatprep.subr.bf16.mxu0 %v1053_v21  ;;  %1082 = vmatprep.subr.bf16.mxu1 %v1497_v23 }
  0x74   : > { %1120 = vmatpush1.bf16.msra.mxu0 %v1055_v26  ;;  %v426_v26 = vld [vmem:[#allocation4 + $0xb0] sm:$0xff]  ;;  %1084 = vmatpush3.bf16.msra.mxu1 %v1500_v29 }
  0x75   : > { %1122 = vmatprep.subr.bf16.mxu0 %v1057_v27  ;;  %v427_v27 = vld [vmem:[#allocation4 + $0xb8] sm:$0xff] }
  0x76   : > { %v1503_v30 = vpack.c.bf16 %v427_v27, %v426_v26 }
  0x78   : > { %1124 = vmatpush1.bf16.msra.mxu0 %v1059_v32  ;;  %v411_v32 = vld [vmem:[#allocation4 + $0x38] sm:$0xff]  ;;  %1086 = vmatprep.subr.bf16.mxu1 %v1503_v30 }
  0x79   : > { %1126 = vmatprep.subr.bf16.mxu0 %v1061_v33  ;;  %v428_v33 = vld [vmem:[#allocation4 + $0xc0] sm:$0xff]  ;;  %v1506_v35 = vpack.c.bf16 %v411_v32, %v410_v31 }
  0x7a   : > { %v1509_v36 = vpack.c.bf16 %v429_v34, %v428_v33 }
  0x7b   : > { %1088 = vmatpush3.bf16.msra.mxu1 %v1506_v35 }
  0x7c   : > { %1128 = vmatpush1.bf16.msra.mxu0 %v1063_v38  ;;  %1090 = vmatprep.subr.bf16.mxu1 %v1509_v36  ;;  %v413_v38 = vld [vmem:[#allocation4 + $0x48] sm:$0xff] }
  0x7d   : > { %1130 = vmatprep.subr.bf16.mxu0 %v1065_v39  ;;  %v1513_v39 = vpack.c.bf16 %v413_v38, %v412_v37 }
  0x7f   : > { %1092 = vmatpush3.bf16.msra.mxu1 %v1513_v39 }
  0x80   : > { %1132 = vmatpush1.bf16.msra.mxu0 %v1067_v44  ;;  %v415_v44 = vld [vmem:[#allocation4 + $0x58] sm:$0xff]  ;;  %1094 = vmatprep.subr.bf16.mxu1 %v1516_v42 }
  0x81   : > { %1134 = vmatprep.subr.bf16.mxu0 %v1069_v45  ;;  %v1518_v45 = vpack.c.bf16 %v415_v44, %v414_v43 }
  0x83   : > { %1096 = vmatpush3.bf16.msra.mxu1 %v1518_v45 }
  0x84   : > { %1136 = vmatpush1.bf16.msra.mxu0 %v1071_v48  ;;  %v1522_v48 = vpack.c.bf16 %v433_v47, %v432_v46 }
  0x86   : > { %1098 = vmatprep.subr.bf16.mxu1 %v1522_v48 }
  0x87   : > { %746 = vmatmul.mubr.f32.vlgmr.msra.gmra.mrb[2].mxu0 %v967_v50  ;;  %v417_v50 = vld [vmem:[#allocation4 + $0x68] sm:$0xff] }
  0x88   : > { %v1524_v51 = vpack.c.bf16 %v417_v50, %v416_v49 }
  0x8a   : > { %1100 = vmatpush3.bf16.msra.mxu1 %v1524_v51 }
 0x13a   : > { %v514_v58 = vpop.f32.mrb[0].mxu0 }
 0x13b   : > { %v1466_v59 = vadd.f32 %v514_v58, %v441_v56  ;;  %v516_v60 = vpop.f32.mrb[1].mxu0  ;;  %v419_v58 = vld [vmem:[#allocation4 + $0x78] sm:$0xff] }
 0x13c   : > { %v1468_v61 = vadd.f32 %v516_v60, %v445_v57 }
 0x13d   : > { %v523_v63 = vmul.f32 %v1466_v59, %v1466_v59 }
 0x13e   : > { %v519_v62 = vadd.f32 %v1468_v61, %v1466_v59  ;;  %v524_v0 = vmul.f32 %v1468_v61, %v1468_v61 }
 0x140   : > { %520 = vadd.xlane.f32.xlu0 %v519_v62  ;;  %v525_v1 = vadd.f32 %v524_v0, %v523_v63 }
 0x144   : > { %526 = vadd.xlane.f32.xlu0 %v525_v1 }
 0x15a   : > { %v747_v2 = vpop.f32.mrb[2].mxu0 }
 0x15b   : > { %v1476_v6 = vadd.f32 %v747_v2, %v441_v56  ;;  %v749_v7 = vpop.f32.mrb[3].mxu0  ;;  %v1528_v56 = vpack.c.bf16 %v435_v54, %v434_v52 }
 0x15c   : > { %v1480_v12 = vadd.f32 %v749_v7, %v445_v57  ;;  %v418_v57 = vld [vmem:[#allocation4 + $0x70] sm:$0xff]  ;;  %v367_v7 = vld [vmem:[%s1584_s3] sm:$0x3] }
 0x15d   : > { %v756_v20 = vmul.f32 %v1476_v6, %v1476_v6  ;;  %v1530_v60 = vpack.c.bf16 %v419_v58, %v418_v57  ;;  %1102 = vmatprep.subr.bf16.mxu1 %v1528_v56  ;;  %v542_v11 = vrot.slane %v367_v7, %v1457_v53  ;;  %v546_v15 = vrot.slane %v367_v7, %v1462_v55 }
 0x15e   : > { %v752_v19 = vadd.f32 %v1480_v12, %v1476_v6  ;;  %v757_v21 = vmul.f32 %v1480_v12, %v1480_v12 }
 0x15f   : > { %1104 = vmatpush3.bf16.msra.mxu1 %v1530_v60 }
 0x160   : > { %753 = vadd.xlane.f32.xlu1 %v752_v19  ;;  %v758_v28 = vadd.f32 %v757_v21, %v756_v20  ;;  %1138 = vmatprep.subr.bf16.mxu1 %v1478_v8  ;;  %v559_v19 = vrot.slane %v368_v9, %v1462_v55 }
 0x164   : > { %759 = vadd.xlane.f32.xlu1 %v758_v28 }
 0x1cd   : > { %v521_v62 = vpop.xlane.xlu0 %520 }
 0x1ce   : > { %v522_v63 = vmul.f32 0.00390625, %v521_v62 }
 0x1d0   : > { %v529_v1 = vmul.f32 %v522_v63, %v522_v63  ;;  %v532_v10 = vsub.f32 %v1466_v59, %v522_v63  ;;  %v533_v8 = vsub.f32 %v1468_v61, %v522_v63 }
 0x1d1   : > { %v527_v0 = vpop.xlane.xlu0 %526 }
 0x1d2   : > { %v528_v2 = vmul.f32 0.00390625, %v527_v0 }
 0x1d4   : > { %v530_v3 = vsub.f32 %v528_v2, %v529_v1 }
 0x1d6   : > { %v531_v4 = vmax.f32 %v530_v3, 0.0 }
 0x1d8   : > { %v534_v5 = vadd.f32 1e-05, %v531_v4 }
 0x1da   : > { %1203 = vrsqrt.f32 %v534_v5 }
 0x1e4   : > { %v1204_v16 = vpop.eup %1203 }
 0x1e5   : > { %v537_v17 = vmul.f32 %v1204_v16, %v533_v8  ;;  %v536_v20 = vmul.f32 %v1204_v16, %v532_v10 }
 0x1e7   : > { %v550_v21 = vmul.f32 %v546_v15, %v537_v17  ;;  %v549_v24 = vmul.f32 %v542_v11, %v536_v20 }
 0x1e9   : > { %v563_v25 = vadd.f32 %v559_v19, %v550_v21  ;;  %v562_v26 = vadd.f32 %v555_v18, %v549_v24  ;;  %v966_v21 = vld [vmem:[%s1589_s8] ss:$0 sm:$0xff] }
 0x1eb   : > { %v567_v27 = vmul.f32 0.70710677, %v563_v25  ;;  %v566_v28 = vmul.f32 0.70710677, %v562_v26  ;;  %v565_v55 = vmul.f32 0.5, %v563_v25  ;;  %v564_v43 = vmul.f32 0.5, %v562_v26 }
 0x1ed   : > { %v754_v59 = vpop.xlane.xlu1 %753  ;;  %1205 = verf.f32 %v567_v27 }
 0x1ee   : > { %v755_v61 = vmul.f32 0.00390625, %v754_v59  ;;  %1207 = verf.f32 %v566_v28 }
 0x1f0   : > { %v762_v32 = vmul.f32 %v755_v61, %v755_v61  ;;  %v765_v49 = vsub.f32 %v1476_v6, %v755_v61  ;;  %v766_v50 = vsub.f32 %v1480_v12, %v755_v61 }
 0x1f1   : > { %v760_v31 = vpop.xlane.xlu1 %759 }
 0x1f2   : > { %v761_v33 = vmul.f32 0.00390625, %v760_v31 }
 0x1f4   : > { %v763_v34 = vsub.f32 %v761_v33, %v762_v32 }
 0x1f6   : > { %v764_v37 = vmax.f32 %v763_v34, 0.0 }
 0x1f7   : > { %v1206_v38 = vpop.eup %1205 }
 0x1f8   : > { %v1208_v53 = vpop.eup %1207  ;;  %v767_v40 = vadd.f32 1e-05, %v764_v37  ;;  %v571_v41 = vadd.f32 1.0, %v1206_v38 }
 0x1f9   : > { %v570_v44 = vadd.f32 1.0, %v1208_v53 }
 0x1fa   : > { %1209 = vrsqrt.f32 %v767_v40  ;;  %v573_v46 = vmul.f32 %v571_v41, %v565_v55 }
 0x1fb   : > { %v572_v47 = vmul.f32 %v570_v44, %v564_v43 }
 0x1fc   : > { %644 = vmatprep.mubr.f32.mxu1 %v573_v46 }
 0x1fd   : > { %645 = vmatmul.mubr.f32.vlgmr.msra.gmra.mrb[0].mxu1 %v572_v47 }
 0x1fe   : > { %1140 = vmatpush3.bf16.msra.mxu1 %v1482_v13 }
 0x1ff   : > { %1142 = vmatprep.subr.bf16.mxu1 %v1484_v14 }
 0x202   : > { %1144 = vmatpush3.bf16.msra.mxu1 %v1494_v22 }
 0x203   : > { %1146 = vmatprep.subr.bf16.mxu1 %v1497_v23 }
 0x204   : > { %v1210_v52 = vpop.eup %1209 }
 0x205   : > { %v769_v54 = vmul.f32 %v1210_v52, %v765_v49  ;;  %v770_v57 = vmul.f32 %v1210_v52, %v766_v50 }
 0x206   : > { %1148 = vmatpush3.bf16.msra.mxu1 %v1500_v29 }
 0x207   : > { %v771_v58 = vmul.f32 %v769_v54, %v542_v11  ;;  %1150 = vmatprep.subr.bf16.mxu1 %v1503_v30  ;;  %v772_v62 = vmul.f32 %v770_v57, %v546_v15 }
 0x209   : > { %v773_v13 = vadd.f32 %v771_v58, %v555_v18  ;;  %v774_v63 = vadd.f32 %v772_v62, %v559_v19  ;;  %v965_v19 = vld [vmem:[%s1588_s7] ss:$0 sm:$0xff] }
 0x20a   : > { %1152 = vmatpush3.bf16.msra.mxu1 %v1506_v35 }
 0x20b   : > { %v777_v14 = vmul.f32 0.70710677, %v773_v13  ;;  %1154 = vmatprep.subr.bf16.mxu1 %v1509_v36  ;;  %v778_v6 = vmul.f32 0.70710677, %v774_v63  ;;  %v776_v23 = vmul.f32 0.5, %v774_v63  ;;  %v775_v30 = vmul.f32 0.5, %v773_v13 }
 0x20d   : > { %1211 = verf.f32 %v778_v6 }
 0x20e   : > { %1156 = vmatpush3.bf16.msra.mxu1 %v1513_v39  ;;  %1213 = verf.f32 %v777_v14 }
 0x20f   : > { %1158 = vmatprep.subr.bf16.mxu1 %v1516_v42 }
 0x212   : > { %1160 = vmatpush3.bf16.msra.mxu1 %v1518_v45  ;;  %v964_v45 = vld [vmem:[%s1587_s6] ss:$0 sm:$0xff] }
 0x213   : > { %1162 = vmatprep.subr.bf16.mxu1 %v1522_v48 }
 0x216   : > { %1164 = vmatpush3.bf16.msra.mxu1 %v1524_v51 }
 0x217   : > { %v1212_v12 = vpop.eup %1211  ;;  %1166 = vmatprep.subr.bf16.mxu1 %v1528_v56 }
 0x218   : > { %v1214_v22 = vpop.eup %1213  ;;  %v782_v29 = vadd.f32 1.0, %v1212_v12 }
 0x219   : > { %v781_v35 = vadd.f32 1.0, %v1214_v22 }
 0x21a   : > { %1168 = vmatpush3.bf16.msra.mxu1 %v1530_v60  ;;  %v784_v36 = vmul.f32 %v782_v29, %v776_v23 }
 0x21b   : > { %v783_v39 = vmul.f32 %v781_v35, %v775_v30 }
 0x21c   : > { %849 = vmatprep.mubr.f32.mxu1 %v784_v36 }
 0x21d   : > { %850 = vmatmul.mubr.f32.vlgmr.msra.gmra.mrb[2].mxu1 %v783_v39 }
 0x2d0   : > { %v1003_v42 = vpop.f32.mrb[0].mxu1 }
 0x2d1   : > { %v1004_v48 = vpop.f32.mrb[1].mxu1 }
 0x2d2   : > { %v1005_v51 = vadd.f32 %v1004_v48, %v1003_v42 }
 0x2d4   : > { %v647_v0 = vadd.f32 %v1005_v51, %v964_v45 }
 0x2d6   : > { %650 = vadd.xlane.f32.xlu0 %v647_v0  ;;  %v653_v56 = vmul.f32 %v647_v0, %v647_v0 }
 0x2da   : > { %654 = vadd.xlane.f32.xlu0 %v653_v56 }
 0x2f0   : > { %v1038_v1 = vpop.f32.mrb[2].mxu1 }
 0x2f1   : > { %v1039_v2 = vpop.f32.mrb[3].mxu1 }
 0x2f2   : > { %v1040_v3 = vadd.f32 %v1039_v2, %v1038_v1 }
 0x2f4   : > { %v852_v4 = vadd.f32 %v1040_v3, %v964_v45 }
 0x2f6   : > { %855 = vadd.xlane.f32.xlu1 %v852_v4  ;;  %v858_v60 = vmul.f32 %v852_v4, %v852_v4 }
 0x2fa   : > { %859 = vadd.xlane.f32.xlu1 %v858_v60 }
 0x363   : > { %v651_v5 = vpop.xlane.xlu0 %650 }
 0x364   : > { %v652_v7 = vmul.f32 0.0078125, %v651_v5 }
 0x366   : > { %v657_v10 = vmul.f32 %v652_v7, %v652_v7  ;;  %v660_v17 = vsub.f32 %v647_v0, %v652_v7 }
 0x367   : > { %v655_v9 = vpop.xlane.xlu0 %654 }
 0x368   : > { %v656_v8 = vmul.f32 0.0078125, %v655_v9 }
 0x36a   : > { %v658_v11 = vsub.f32 %v656_v8, %v657_v10 }
 0x36c   : > { %v659_v15 = vmax.f32 %v658_v11, 0.0 }
 0x36e   : > { %v661_v16 = vadd.f32 1e-05, %v659_v15 }
 0x370   : > { %1215 = vrsqrt.f32 %v661_v16 }
 0x37a   : > { %v1216_v18 = vpop.eup %1215 }
 0x37b   : > { %v663_v20 = vmul.f32 %v1216_v18, %v660_v17 }
 0x37d   : > { %v670_v24 = vmul.f32 %v965_v19, %v663_v20 }
 0x37f   : > { %v677_v25 = vadd.f32 %v966_v21, %v670_v24 }
 0x381   : > { %678 = vst [vmem:[%s364_s26] sm:$0xff] %v677_v25 }
 0x383   : > { %v856_v26 = vpop.xlane.xlu1 %855 }
 0x384   : > { %v857_v27 = vmul.f32 0.0078125, %v856_v26 }
 0x386   : > { %v862_v59 = vmul.f32 %v857_v27, %v857_v27  ;;  %v865_v34 = vsub.f32 %v852_v4, %v857_v27 }
 0x387   : > { %v860_v28 = vpop.xlane.xlu1 %859 }
 0x388   : > { %v861_v61 = vmul.f32 0.0078125, %v860_v28 }
 0x38a   : > { %v863_v31 = vsub.f32 %v861_v61, %v862_v59 }
 0x38c   : > { %v864_v32 = vmax.f32 %v863_v31, 0.0 }
 0x38e   : > { %v866_v33 = vadd.f32 1e-05, %v864_v32 }
 0x390   : > { %1217 = vrsqrt.f32 %v866_v33 }
 0x39a   : > { %v1218_v37 = vpop.eup %1217 }
 0x39b   : > { %v868_v38 = vmul.f32 %v1218_v37, %v865_v34 }
 0x39d   : > { %v869_v53 = vmul.f32 %v965_v19, %v868_v38 }
 0x39f   : > { %v870_v40 = vadd.f32 %v966_v21, %v869_v53 }
 0x3a1   : > { %968 = vst [vmem:[%s364_s26 + $0x8] sm:$0xff] %v870_v40 }
 0x3a2 PF: > { %s21_s30 = sadd.s32 1, %s1289_s30  }
 0x3a3   : > { %p18_p2 = scmp.ge.s32.totalorder %s21_s30, 4  }
 0x3a5   :  { %20 = sbr.rel (!%p18_p2) target bundleno = 2 (0x2), region = 97 }
 0x3ac   :  { %895 = vsyncpa [#allocation3], 1 }
 0x3ad   :  { %897 = vsyncpa [#allocation3 + $0x1], 1 }
 0x3ae   :  { %898 = vsyncpa [#allocation5], 1 }

</bundles_post_ra>
